<compile_context>
chip_gen: v7x
topology: tpu7x:2x2x1
jax: 0.10.0
libtpu: 0.0.40
codegen_flags: <defaults>
</compile_context>

<pallas_src>
import numpy as np
import jax
import jax.numpy as jnp
from jax.experimental import pallas as pl
from jax.experimental.pallas import tpu as pltpu

EPS = 1e-5  # nn.BatchNorm2d default eps


def _pick_tile_rows(H, max_tile_rows):
    """Largest multiple-of-8 divisor of H that is <= max_tile_rows (else H)."""
    if H <= max_tile_rows:
        return H
    cands = [d for d in range(8, max_tile_rows + 1, 8) if H % d == 0]
    return max(cands) if cands else H


def _compiler_params():
    return pltpu.CompilerParams(
        dimension_semantics=("parallel", "parallel"),
        vmem_limit_bytes=64 * 1024 * 1024,   # safe on v5e/v6e/v7x
    )


def conv_block_forward(x_nchw, params, max_tile_rows=32):
    """conv_block_nested(3, 256, 3) forward; input/output are NCHW."""
    w1, b1, g1, be1, w2, b2, g2, be2 = params
    del b1, b2  # conv bias followed by batch-stat BN cancels exactly

    N, Cin, H, W = x_nchw.shape
    Cmid = w1.shape[3]
    Cout = w2.shape[3]

    TR = _pick_tile_rows(H, max_tile_rows)   # output rows per tile (divides H)
    n_tiles = H // TR
    TRp, Wp = TR + 2, W + 2                  # tile extent incl. conv2 halo/pad
    M1 = TRp * Wp
    K1 = 9 * Cin

    # ---------------- wrapper-side layout prep (cheap, 3-channel input) -----
    x = jnp.transpose(x_nchw, (0, 2, 3, 1)).astype(jnp.float32)        # NHWC
    xpp = jnp.pad(x, ((0, 0), (2, 2), (2, 2), (0, 0)))
    # im2col over the *extended* (H+2, W+2) grid: taps folded into K = 9*Cin.
    wins = [xpp[:, dy:dy + H + 2, dx:dx + W + 2, :]
            for dy in range(3) for dx in range(3)]
    pfull = jnp.concatenate(wins, axis=-1)                             # (N,H+2,W+2,K1)
    # Expand into disjoint per-tile blocks (each carries its own 1-row halo)
    # so the Pallas grid streams non-overlapping, double-buffered blocks.
    tiles = [pfull[:, t * TR:t * TR + TRp] for t in range(n_tiles)]
    patches = jnp.stack(tiles, axis=1).reshape(N, n_tiles, M1, K1)
    patches = patches.astype(jnp.bfloat16)

    w1f = w1.reshape(K1, Cmid).astype(jnp.bfloat16)                    # (27, Cmid)
    w2s = jnp.transpose(w2, (2, 0, 1, 3)).reshape(Cmid, 9 * Cout)
    w2s = w2s.astype(jnp.bfloat16)                                     # (Cmid, 27)
    sel_np = np.zeros((9 * Cout, Cout), np.float32)                    # tap -> cout fold
    sel_np[np.arange(9 * Cout), np.arange(9 * Cout) % Cout] = 1.0
    sel = jnp.asarray(sel_np)

    cnt = float(N * H * W)
    cparams = _compiler_params()

    # ---------------------------- kernels ----------------------------------
    def conv1_tile(p_ref, w1_ref):
        # single K=27 im2col matmul, bf16 operands, f32 accumulation
        return jnp.dot(p_ref[0, 0], w1_ref[...],
                       preferred_element_type=jnp.float32)             # (M1, Cmid)

    def stats1_kernel(p_ref, w1_ref, s_ref, ss_ref):
        y1 = conv1_tile(p_ref, w1_ref).reshape(TRp, Wp, Cmid)
        v = y1[1:1 + TR, 1:1 + W, :].reshape(TR * W, Cmid)             # valid pixels
        s_ref[0, 0] = jnp.sum(v, axis=0, keepdims=True)
        ss_ref[0, 0] = jnp.sum(v * v, axis=0, keepdims=True)

    def main_kernel(p_ref, w1_ref, w2_ref, sel_ref, sc1_ref, sh1_ref,
                    y2_ref, s_ref, ss_ref):
        r0 = pl.program_id(1) * TR
        # conv1 (recomputed with halo) + fused BN1 scale/shift + ReLU
        y1 = conv1_tile(p_ref, w1_ref).reshape(TRp, Wp, Cmid)
        a1 = jnp.maximum(y1 * sc1_ref[...] + sh1_ref[...], 0.0)
        # zero everything outside the image: that IS conv2's zero padding
        li = jax.lax.broadcasted_iota(jnp.int32, (TRp, Wp, 1), 0)
        lj = jax.lax.broadcasted_iota(jnp.int32, (TRp, Wp, 1), 1)
        valid = (li + r0 >= 1) & (li + r0 <= H) & (lj >= 1) & (lj <= W)
        a1 = jnp.where(valid, a1, 0.0)
        a1 = a1.reshape(M1, Cmid).astype(jnp.bfloat16)
        # conv2: one K=256 matmul with 9 taps stacked on the output axis
        z = jnp.dot(a1, w2_ref[...], preferred_element_type=jnp.float32)
        z3 = z.reshape(TRp, Wp, 9 * Cout)
        lane = jax.lax.broadcasted_iota(jnp.int32, (TR, W, 9 * Cout), 2)
        acc = jnp.zeros((TR, W, 9 * Cout), jnp.float32)
        for dy in range(3):
            for dx in range(3):
                tap = dy * 3 + dx
                keep = (lane >= tap * Cout) & (lane < (tap + 1) * Cout)
                acc = acc + jnp.where(keep, z3[dy:dy + TR, dx:dx + W, :], 0.0)
        out2d = jnp.dot(acc.reshape(TR * W, 9 * Cout), sel_ref[...],
                        preferred_element_type=jnp.float32)            # (TR*W, Cout)
        y2_ref[0] = out2d.reshape(TR, W, Cout)
        s_ref[0, 0] = jnp.sum(out2d, axis=0, keepdims=True)
        ss_ref[0, 0] = jnp.sum(out2d * out2d, axis=0, keepdims=True)

    def finalize_kernel(y2_ref, sc2_ref, sh2_ref, out_ref):
        out_ref[...] = jnp.maximum(
            y2_ref[...] * sc2_ref[...] + sh2_ref[...], 0.0)

    # ---------------- pass 1: BN1 global batch statistics ------------------
    sum1, sq1 = pl.pallas_call(
        stats1_kernel,
        grid=(N, n_tiles),
        in_specs=[
            pl.BlockSpec((1, 1, M1, K1), lambda n, t: (n, t, 0, 0)),
            pl.BlockSpec((K1, Cmid), lambda n, t: (0, 0)),
        ],
        out_specs=(
            pl.BlockSpec((1, 1, 1, Cmid), lambda n, t: (n, t, 0, 0)),
            pl.BlockSpec((1, 1, 1, Cmid), lambda n, t: (n, t, 0, 0)),
        ),
        out_shape=(
            jax.ShapeDtypeStruct((N, n_tiles, 1, Cmid), jnp.float32),
            jax.ShapeDtypeStruct((N, n_tiles, 1, Cmid), jnp.float32),
        ),
        compiler_params=cparams,
    )(patches, w1f)

    mean1 = jnp.sum(sum1[:, :, 0, :], axis=(0, 1)) / cnt
    var1 = jnp.maximum(jnp.sum(sq1[:, :, 0, :], axis=(0, 1)) / cnt
                       - mean1 * mean1, 0.0)
    scale1 = g1 * jax.lax.rsqrt(var1 + EPS)
    shift1 = be1 - mean1 * scale1

    # ---------- pass 2: conv1 + BN1 + ReLU + conv2 (+ BN2 statistics) -------
    y2, sum2, sq2 = pl.pallas_call(
        main_kernel,
        grid=(N, n_tiles),
        in_specs=[
            pl.BlockSpec((1, 1, M1, K1), lambda n, t: (n, t, 0, 0)),
            pl.BlockSpec((K1, Cmid), lambda n, t: (0, 0)),
            pl.BlockSpec((Cmid, 9 * Cout), lambda n, t: (0, 0)),
            pl.BlockSpec((9 * Cout, Cout), lambda n, t: (0, 0)),
            pl.BlockSpec((1, Cmid), lambda n, t: (0, 0)),
            pl.BlockSpec((1, Cmid), lambda n, t: (0, 0)),
        ],
        out_specs=(
            pl.BlockSpec((1, TR, W, Cout), lambda n, t: (n, t, 0, 0)),
            pl.BlockSpec((1, 1, 1, Cout), lambda n, t: (n, t, 0, 0)),
            pl.BlockSpec((1, 1, 1, Cout), lambda n, t: (n, t, 0, 0)),
        ),
        out_shape=(
            jax.ShapeDtypeStruct((N, H, W, Cout), jnp.float32),
            jax.ShapeDtypeStruct((N, n_tiles, 1, Cout), jnp.float32),
            jax.ShapeDtypeStruct((N, n_tiles, 1, Cout), jnp.float32),
        ),
        compiler_params=cparams,
    )(patches, w1f, w2s, sel,
      scale1.reshape(1, Cmid).astype(jnp.float32),
      shift1.reshape(1, Cmid).astype(jnp.float32))

    mean2 = jnp.sum(sum2[:, :, 0, :], axis=(0, 1)) / cnt
    var2 = jnp.maximum(jnp.sum(sq2[:, :, 0, :], axis=(0, 1)) / cnt
                       - mean2 * mean2, 0.0)
    scale2 = g2 * jax.lax.rsqrt(var2 + EPS)
    shift2 = be2 - mean2 * scale2

    # ------------------------ pass 3: BN2 + ReLU ----------------------------
    out_nhwc = pl.pallas_call(
        finalize_kernel,
        grid=(N, n_tiles),
        in_specs=[
            pl.BlockSpec((1, TR, W, Cout), lambda n, t: (n, t, 0, 0)),
            pl.BlockSpec((1, 1, 1, Cout), lambda n, t: (0, 0, 0, 0)),
            pl.BlockSpec((1, 1, 1, Cout), lambda n, t: (0, 0, 0, 0)),
        ],
        out_specs=pl.BlockSpec((1, TR, W, Cout), lambda n, t: (n, t, 0, 0)),
        out_shape=jax.ShapeDtypeStruct((N, H, W, Cout), jnp.float32),
        compiler_params=cparams,
    )(y2,
      scale2.reshape(1, 1, 1, Cout).astype(jnp.float32),
      shift2.reshape(1, 1, 1, Cout).astype(jnp.float32))

    return jnp.transpose(out_nhwc, (0, 3, 1, 2))                        # NCHW


def model_forward(sample, params, max_tile_rows=32):
    """Model.forward: self.output = self.net(sample['uieb_inp'])."""
    # TODO(synk): optimizer / L1 loss / EMA meters / evaluate() loop are
    # training utilities with no kernel equivalent; only net.forward is done.
    return conv_block_forward(sample['uieb_inp'], params, max_tile_rows)


def init_params(key, in_ch=3, mid_ch=256, out_ch=3):
    """Deterministic parameter init (shapes follow conv_block_nested.__init__)."""
    k1, k2, k3, k4 = jax.random.split(key, 4)
    w1_oihw = 0.05 * jax.random.normal(k1, (mid_ch, in_ch, 3, 3), jnp.float32)
    b1 = 0.05 * jax.random.normal(k2, (mid_ch,), jnp.float32)
    w2_oihw = 0.05 * jax.random.normal(k3, (out_ch, mid_ch, 3, 3), jnp.float32)
    b2 = 0.05 * jax.random.normal(k4, (out_ch,), jnp.float32)
    w1 = jnp.transpose(w1_oihw, (2, 3, 1, 0))   # HWIO
    w2 = jnp.transpose(w2_oihw, (2, 3, 1, 0))   # HWIO
    g1 = jnp.ones((mid_ch,), jnp.float32)
    be1 = jnp.zeros((mid_ch,), jnp.float32)
    g2 = jnp.ones((out_ch,), jnp.float32)
    be2 = jnp.zeros((out_ch,), jnp.float32)
    return (w1, b1, g1, be1, w2, b2, g2, be2)


def reference_forward(x_nchw, params):
    """Pure-JAX reference (lax.conv + batch-stat BN) for validation."""
    w1, b1, g1, be1, w2, b2, g2, be2 = params
    x = jnp.transpose(x_nchw, (0, 2, 3, 1)).astype(jnp.float32)
    dn = jax.lax.conv_dimension_numbers(x.shape, w1.shape,
                                        ('NHWC', 'HWIO', 'NHWC'))

    def block(inp, w, b, g, be):
        y = jax.lax.conv_general_dilated(inp, w, (1, 1), 'SAME',
                                         dimension_numbers=dn) + b
        m = jnp.mean(y, axis=(0, 1, 2), keepdims=True)
        v = jnp.mean((y - m) ** 2, axis=(0, 1, 2), keepdims=True)
        y = (y - m) * jax.lax.rsqrt(v + EPS) * g + be
        return jnp.maximum(y, 0.0)

    y = block(x, w1, b1, g1, be1)
    y = block(y, w2, b2, g2, be2)
    return jnp.transpose(y, (0, 3, 1, 2))


if __name__ == "__main__":
    key = jax.random.PRNGKey(0)
    k_inp, k_ref, k_par = jax.random.split(key, 3)

    # sample = {'uieb_inp': ..., 'uieb_ref': ...}  (NCHW, small synthetic shapes)
    sample = {
        'uieb_inp': jax.random.normal(k_inp, (2, 3, 16, 16), jnp.float32),
        'uieb_ref': jax.random.normal(k_ref, (2, 3, 16, 16), jnp.float32),
    }
    params = init_params(k_par)

    # max_tile_rows=8 -> 2 row tiles per image: exercises the tiled grid and
    # the two-pass global BatchNorm statistics.
    out = model_forward(sample, params, max_tile_rows=8)
    out = jax.block_until_ready(out)

    ref = jax.block_until_ready(reference_forward(sample['uieb_inp'], params))
    assert out.shape == (2, 3, 16, 16)
    err = float(jnp.max(jnp.abs(out - ref)))
    assert err < 1e-1, f"mismatch vs pure-JAX reference: {err}"

    print("KERNEL_OK")
</pallas_src>

<mosaic_0001>
module attributes {stable_mosaic.version = 11 : i64} {
  func.func @stats1_kernel(%arg0: i32, %arg1: i32, %arg2: memref<1x1x180x27xbf16, #tpu.memory_space<vmem>>, %arg3: memref<27x256xbf16, #tpu.memory_space<vmem>>, %arg4: memref<1x1x1x256xf32, #tpu.memory_space<vmem>>, %arg5: memref<1x1x1x256xf32, #tpu.memory_space<vmem>>) attributes {dimension_semantics = [#tpu.dimension_semantics<parallel>, #tpu.dimension_semantics<parallel>], iteration_bounds = array<i64: 2, 2>, scalar_prefetch = 0 : i64, scratch_operands = 0 : i64, tpu.core_type = #tpu.core_type<tc>, window_params = [{transform_indices = @transform_0, window_bounds = array<i64: 1, 1, 180, 27>}, {pipeline_mode = #tpu.pipeline_mode<synchronous>, transform_indices = @transform_1, window_bounds = array<i64: 27, 256>}, {transform_indices = @transform_2, window_bounds = array<i64: 1, 1, 1, 256>}, {transform_indices = @transform_3, window_bounds = array<i64: 1, 1, 1, 256>}]} {
    %c0 = arith.constant 0 : index
    %c0_0 = arith.constant 0 : index
    %c0_1 = arith.constant 0 : index
    %c0_2 = arith.constant 0 : index
    %0 = vector.load %arg2[%c0, %c0_0, %c0_1, %c0_2] : memref<1x1x180x27xbf16, #tpu.memory_space<vmem>>, vector<1x1x180x27xbf16>
    %1 = vector.shape_cast %0 : vector<1x1x180x27xbf16> to vector<180x27xbf16>
    %c0_3 = arith.constant 0 : index
    %c0_4 = arith.constant 0 : index
    %2 = vector.load %arg3[%c0_3, %c0_4] : memref<27x256xbf16, #tpu.memory_space<vmem>>, vector<27x256xbf16>
    %cst = arith.constant dense<0.000000e+00> : vector<180x256xf32>
    %3 = tpu.matmul %1, %2, %cst {dimension_numbers = #tpu.dot_dimension_numbers<[1], [0], [0], [1], [0, 0, 1, 1], [], []>} : vector<180x27xbf16>, vector<27x256xbf16>, vector<180x256xf32> -> vector<180x256xf32>
    %4 = vector.shape_cast %3 : vector<180x256xf32> to vector<10x18x256xf32>
    %5 = vector.extract_strided_slice %4 {offsets = [1, 1, 0], sizes = [8, 16, 256], strides = [1, 1, 1]} : vector<10x18x256xf32> to vector<8x16x256xf32>
    %6 = vector.shape_cast %5 : vector<8x16x256xf32> to vector<128x256xf32>
    %cst_5 = arith.constant dense<0.000000e+00> : vector<256xf32>
    %7 = vector.multi_reduction <add>, %6, %cst_5 [0] : vector<128x256xf32> to vector<256xf32>
    %8 = vector.shape_cast %7 : vector<256xf32> to vector<1x256xf32>
    %c0_6 = arith.constant 0 : index
    %c0_7 = arith.constant 0 : index
    %c0_8 = arith.constant 0 : index
    %c0_9 = arith.constant 0 : index
    %9 = vector.load %arg4[%c0_6, %c0_7, %c0_8, %c0_9] : memref<1x1x1x256xf32, #tpu.memory_space<vmem>>, vector<1x1x1x256xf32>
    %10 = vector.shape_cast %9 : vector<1x1x1x256xf32> to vector<1x256xf32>
    %11 = vector.shape_cast %8 : vector<1x256xf32> to vector<1x1x1x256xf32>
    tpu.vector_store %arg4[%c0_6, %c0_7, %c0_8, %c0_9], %11 {strides = array<i32>} : memref<1x1x1x256xf32, #tpu.memory_space<vmem>>, vector<1x1x1x256xf32>,
    %12 = arith.mulf %6, %6 : vector<128x256xf32>
    %cst_10 = arith.constant dense<0.000000e+00> : vector<256xf32>
    %13 = vector.multi_reduction <add>, %12, %cst_10 [0] : vector<128x256xf32> to vector<256xf32>
    %14 = vector.shape_cast %13 : vector<256xf32> to vector<1x256xf32>
    %c0_11 = arith.constant 0 : index
    %c0_12 = arith.constant 0 : index
    %c0_13 = arith.constant 0 : index
    %c0_14 = arith.constant 0 : index
    %15 = vector.load %arg5[%c0_11, %c0_12, %c0_13, %c0_14] : memref<1x1x1x256xf32, #tpu.memory_space<vmem>>, vector<1x1x1x256xf32>
    %16 = vector.shape_cast %15 : vector<1x1x1x256xf32> to vector<1x256xf32>
    %17 = vector.shape_cast %14 : vector<1x256xf32> to vector<1x1x1x256xf32>
    tpu.vector_store %arg5[%c0_11, %c0_12, %c0_13, %c0_14], %17 {strides = array<i32>} : memref<1x1x1x256xf32, #tpu.memory_space<vmem>>, vector<1x1x1x256xf32>,
    return
  }
  func.func @transform_0(%arg0: i32, %arg1: i32) -> (i32, i32, i32, i32) {
    %c0_i32 = arith.constant 0 : i32
    %c0_i32_0 = arith.constant 0 : i32
    %c0_i32_1 = arith.constant 0 : i32
    return %arg0, %arg1, %c0_i32, %c0_i32_0 : i32, i32, i32, i32
  }
  func.func @transform_1(%arg0: i32, %arg1: i32) -> (i32, i32) {
    %c0_i32 = arith.constant 0 : i32
    %c0_i32_0 = arith.constant 0 : i32
    %c0_i32_1 = arith.constant 0 : i32
    return %c0_i32, %c0_i32_0 : i32, i32
  }
  func.func @transform_2(%arg0: i32, %arg1: i32) -> (i32, i32, i32, i32) {
    %c0_i32 = arith.constant 0 : i32
    %c0_i32_0 = arith.constant 0 : i32
    %c0_i32_1 = arith.constant 0 : i32
    return %arg0, %arg1, %c0_i32, %c0_i32_0 : i32, i32, i32, i32
  }
  func.func @transform_3(%arg0: i32, %arg1: i32) -> (i32, i32, i32, i32) {
    %c0_i32 = arith.constant 0 : i32
    %c0_i32_0 = arith.constant 0 : i32
    %c0_i32_1 = arith.constant 0 : i32
    return %arg0, %arg1, %c0_i32, %c0_i32_0 : i32, i32, i32, i32
  }
}

</mosaic_0001>

<bundles_post_ra>
// kernel: tpu_custom_call.1
= control target key start
LH: loop header
LB: loop body
LE: loop exit
PB: predicated region body
PF: predicated region fallthrough
CT: control target
= control target key end

     0   :  { %s3575_s0 = inlined_call_operand.hbm [shape: bf16[2,2,180,27], index: 0, kind: input, shape index: {}]   ;;  %s3576_s1 = inlined_call_operand.hbm [shape: bf16[27,256], index: 1, kind: input, shape index: {}]   ;;  %s3577_s2 = inlined_call_operand.hbm [shape: f32[2,2,1,256], index: 2, kind: output, shape index: {0}]   ;;  %s3578_s3 = inlined_call_operand.hbm [shape: f32[2,2,1,256], index: 3, kind: output, shape index: {1}]  }
   0x1   :  { %3589 = sst [smem:[#allocation18_spill]] %s3576_s1 }
   0x2   :  { %9 = vsyncpa [#allocation3], 0 }
   0x3   :  { %11 = vsyncpa [#allocation3 + $0x1], 0 }
   0x4   :  { %12 = vsyncpa [#allocation6], 0 }
   0x5   :  { %13 = vsyncpa [#allocation4], 0 }
   0x6   :  { %15 = vsyncpa [#allocation4 + $0x1], 0 }
   0x7   :  { %16 = vsyncpa [#allocation9], 0 }
   0x8   :  { %18 = vsyncpa [#allocation9 + $0x1], 0  ;;  %s2644_s12 = smov 0   ;;  %s2646_s13 = smov 0  }
   0x9   :  { %s2648_s14 = smov 0   ;;  %s2650_s15 = smov 0  }
   0xa   :  { %s2652_s16 = smov 0   ;;  %s2654_s17 = smov 0  }
   0xb   :  { %s2656_s18 = smov 0   ;;  %s2658_s19 = smov 0  }
   0xc LB: > { %3590 = sst [smem:[#allocation14_spill]] %s2602_s17  ;;  %s2234_s20 = sadd.s32 4294967295, %s2610_s19   ;;  %s2610_s19 = sphi %s2658_s19, %s24_s19   ;;  %s2606_s18 = sphi %s2656_s18, %s3642_s18   ;;  %s2602_s17 = sphi %s2654_s17, %s3636_s17   ;;  %s2598_s16 = sphi %s2652_s16, %s3641_s16   ;;  %s2594_s15 = sphi %s2650_s15, %s3635_s15   ;;  %s2590_s14 = sphi %s2648_s14, %s3640_s14   ;;  %s2586_s13 = sphi %s2646_s13, %s3639_s13   ;;  %s2582_s12 = sphi %s2644_s12, %s3638_s12  }
   0xd   : > { %s2235_s21 = sadd.s32 4294967294, %s2610_s19   ;;  %p58_p0 = scmp.ne.s32.totalorder %s2586_s13, %s2582_s12 }
   0xe   : > { %p2688_p1 = scmp.eq.s32.totalorder %s2234_s20, 0  ;;  %p2692_p2 = scmp.eq.s32.totalorder %s2234_s20, 3 }
   0xf   : > { %p111_p3 = scmp.eq.s32.totalorder %s2235_s21, 3  ;;  %p2236_p5 = scmp.ge.s32.totalorder %s2610_s19, 1 }
  0x10   : > { %s3591_s22 = scalar_select %p2688_p1, 1, 0 }
  0x11   : > { %s3592_s23 = scalar_select %p2692_p2, 1, 0 }
  0x12   : > { %p2698_p4 = por %p2688_p1, %p58_p0  ;;  %p2703_p6 = por %p111_p3, %p58_p0 }
  0x13   : > { %p146_p7 = scmp.lt.s32.totalorder %s2610_s19, 5  ;;  %s2612_s27 = smov [#allocation5]  }
  0x14   : > { %s3593_s24 = scalar_select %p2698_p4, 1, 0 }
  0x15   : > { %s3594_s25 = scalar_select %p2703_p6, 1, 0 }
  0x16   : > { %p2708_p8 = pnand %p2236_p5, %p146_p7  ;;  %s158_s28 = sshll.u32 %s2612_s27, 4  ;;  %s159_s28 = int_to_ptr.vmem [resolvable:$true] %s158_s28 }
  0x17   : > { %s3597_s1 = sld [smem:[#allocation18_spill]] }
  0x18   : > { %s3595_s26 = scalar_select %p2708_p8, 1, 0 }
  0x19   : > { %p2308_p9 = pneg %p2708_p8 }
  0x1b   : > { %p2716_p10 = pnand %p2308_p9, %p2688_p1 }
  0x1d   : > { %s2418_s5 = scalar_lea.hbm %s3597_s1, 512  ;;  %p2420_p12 = pneg %p2716_p10 }
  0x1e   : > { %p2419_p11 = scmp.ne.s32.totalorder %s3597_s1, %s2418_s5  ;;  %p2425_p3 = scmp.lt.u32.totalorder %s2418_s5, %s3597_s1 }
  0x20   : > { %p2421_p13 = pnand %p2420_p12, %p2419_p11 }
  0x22   : > { %p2422_p0 = pneg %p2421_p13 }
  0x24   : > { %p2427_p5 = pnand %p2425_p3, %p2422_p0 }
  0x26   : > { %2430 = shalt.err (!%p2427_p5)
}
  0x27   : > { %s2431_s10 = scalar_lea.vmem %s159_s28, 512  ;;  %p2439_p1 = scmp.lt.s32.totalorder %s159_s28, %s159_s28 }
  0x28   : > { %p2432_p7 = scmp.ne.s32.totalorder %s159_s28, %s2431_s10  ;;  %p2440_p4 = scmp.lt.s32.totalorder %s2431_s10, %s2431_s10 }
  0x2a   : > { %p2434_p9 = pnand %p2432_p7, %p2420_p12  ;;  %p2441_p8 = por %p2440_p4, %p2439_p1 }
  0x2c   : > { %p2435_p6 = pneg %p2434_p9 }
  0x2e   : > { %p2442_p2 = pnand %p2441_p8, %p2435_p6 }
  0x30   : > { %2445 = shalt.err (!%p2442_p2)
}
  0x31   : > { %s2613_s11 = smov 128   ;;  %s2614_s20 = smov 8  }
  0x32   : > { %2311 = dma.hbm_to_vmem [thread:$0]  (!%p2716_p10), %s3597_s1, 512, %s159_s28, [#allocation6], %s2613_s11, %s2613_s11, %s2614_s20  }
  0x33   : > { %s33_s30 = sadd.s32 1, %s2602_s17  ;;  %s36_s4 = sadd.s32 1, %s2606_s18 }
  0x34   : > { %p34_p1 = scmp.ge.s32.totalorder %s33_s30, 2  ;;  %s45_s5 = sadd.s32 1, %s2590_s14 }
  0x35   : > { %p52_p2 = scmp.ne.s32.totalorder %s2590_s14, %s2586_s13  ;;  %p53_p4 = scmp.eq.s32.totalorder %s2610_s19, 0 }
  0x36   : > { %s3644_s30 = smov (%p34_p1, %s33_s30), 0  ;;  %s3646_s4 = smov (!%p34_p1, %s36_s4), %s2606_s18 }
  0x37   : > { %3598 = sst [smem:[#allocation15_spill]] %s3644_s30  ;;  %s41_s6 = ssub.s32 %s2602_s17, %s3644_s30 }
  0x38   : > { %p38_p6 = scmp.ge.s32.totalorder %s3646_s4, 2  ;;  %p3599_p8 = scmp.ne.s32.totalorder %s3592_s23, 0 }
  0x39   : > { %p54_p10 = por %p53_p4, %p52_p2  ;;  %p2324_p12 = scmp.lt.s32.totalorder %s2610_s19, 4 }
  0x3a   : > { %p2749_p11 = por %p3599_p8, %p52_p2  ;;  %s3648_s4 = smov (%p38_p6, %s3646_s4), 0 }
  0x3b   : > { %3601 = sst [smem:[#allocation16_spill]] %s3648_s4  ;;  %s172_s28 = sand.u32 1, %s2590_s14  }
  0x3c   : > { %s2295_s7 = smul.u32 23, %s2602_s17  ;;  %s40_s8 = ssub.s32 %s2606_s18, %s3648_s4 }
  0x3d   : > { %s42_s9 = sor.u32 %s41_s6, %s40_s8  ;;  %s2294_s10 = smul.u32 92, %s172_s28 }
  0x3e   : > { %p43_p13 = scmp.eq.s32.totalorder %s42_s9, 0  ;;  %s2296_s11 = smul.u32 46, %s2606_s18 }
  0x3f   : > { %p2761_p0 = pnand %p2324_p12, %p54_p10  ;;  %s176_s27 = scalar_lea.vmem [#allocation2], %s2294_s10 }
  0x40   : > { %s2766_s23 = scalar_select %p43_p13, %s2590_s14, %s45_s5  }
  0x41   : > { %s182_s21 = sadd.s32 %s2296_s11, %s2295_s7  ;;  %s185_s1 = sshll.u32 %s176_s27, 4  ;;  %s2768_s1 = int_to_ptr.vmem [resolvable:$true] %s185_s1 }
  0x42   : > { %s2239_s30 = sshll.u32 %s182_s21, 6  ;;  %s2775_s8 = scalar_lea.sflag [#allocation3], %s172_s28 }
  0x43   : > { %s2773_s6 = scalar_lea.hbm %s3575_s0, %s2239_s30  ;;  %p2448_p5 = pneg %p2761_p0 }
  0x44   : > { %s2446_s9 = scalar_lea.hbm %s2773_s6, 1472  ;;  %s2451_s17 = scalar_lea.hbm %s3575_s0, 5888 }
  0x45   : > { %p2447_p3 = scmp.ne.s32.totalorder %s2773_s6, %s2446_s9  ;;  %p2452_p1 = scmp.lt.u32.totalorder %s2773_s6, %s3575_s0 }
  0x46   : > { %p2453_p2 = scmp.lt.u32.totalorder %s2451_s17, %s2446_s9  ;;  %p2455_p6 = scmp.lt.u32.totalorder %s2446_s9, %s2773_s6 }
  0x47   : > { %p2449_p7 = pnand %p2448_p5, %p2447_p3 }
  0x48   : > { %p2454_p4 = por %p2453_p2, %p2452_p1 }
  0x49   : > { %p2450_p9 = pneg %p2449_p7 }
  0x4a   : > { %p2456_p8 = por %p2455_p6, %p2454_p4 }
  0x4c   : > { %p2457_p10 = pnand %p2456_p8, %p2450_p9 }
  0x4e   : > { %2460 = shalt.err (!%p2457_p10)
}
  0x4f   : > { %s2461_s28 = scalar_lea.vmem %s2768_s1, 1472  ;;  %s2615_s10 = smov [#allocation2]  }
  0x50   : > { %p2462_p12 = scmp.ne.s32.totalorder %s2768_s1, %s2461_s28  ;;  %s2466_s11 = sshll.u32 %s2615_s10, 4  ;;  %s2467_s11 = int_to_ptr.vmem [resolvable:$false] %s2466_s11 }
  0x51   : > { %s2468_s21 = scalar_lea.vmem %s2467_s11, 2944  ;;  %p2469_p7 = scmp.lt.s32.totalorder %s2768_s1, %s2467_s11 }
  0x52   : > { %p2464_p13 = pnand %p2462_p12, %p2448_p5  ;;  %p2470_p1 = scmp.lt.s32.totalorder %s2468_s21, %s2461_s28 }
  0x54   : > { %p2465_p3 = pneg %p2464_p13  ;;  %p2471_p2 = por %p2470_p1, %p2469_p7 }
  0x56   : > { %p2472_p4 = pnand %p2471_p2, %p2465_p3 }
  0x58   : > { %2475 = shalt.err (!%p2472_p4)
}
  0x59   : > { %s2616_s27 = smov 64   ;;  %s2617_s9 = smov 4  }
  0x5a   : > { %2315 = dma.hbm_to_vmem [thread:$0]  (!%p2761_p0), %s2773_s6, 1472, %s2768_s1, %s2775_s8, %s2616_s27, %s2616_s27, %s2617_s9  }
  0x5b   : > { %p3603_p5 = scmp.ne.s32.totalorder %s3595_s26, 0 }
  0x5d   : > { %197 = sbr.rel (%p3603_p5) target bundleno = 546 (0x222), region = 28 }
  0x64   : > { %s2806_s5 = sand.u32 1, %s2586_s13   ;;  %p3604_p9 = scmp.ne.s32.totalorder %s3593_s24, 0 }
  0x65   : > { %s2297_s7 = smul.u32 92, %s2806_s5  ;;  %s200_s17 = scalar_lea.sflag [#allocation3], %s2806_s5 }
  0x67   : > { %s2810_s30 = scalar_lea.vmem [#allocation2], %s2297_s7 }
  0x68   : > { %2565 = dma.done.wait (%p3604_p9), %s200_s17, 1472  }
  0x69   : > { %2567 = vsyncadd (%p3604_p9), %s200_s17, 4294965824  ;;  %p3605_p0 = scmp.ne.s32.totalorder %s3591_s22, 0 }
  0x6b   : > { %2569 = dma.done.wait (%p3605_p0), [#allocation6], 512  }
  0x6c   : > { %2571 = vsyncadd (%p3605_p0), [#allocation6], 4294966784  ;;  %v2618_v0 = vmov 0   ;;  %vm376_vm0 = vcmask 1044480   ;;  %vm377_vm1 = vcmask 1045504   ;;  %v2619_v1 = vmov 65535  }
  0x6d   : > { %418 = vmatprep.mubr.bf16.mxu0 %v2618_v0  ;;  %474 = vmatprep.mubr.bf16.mxu1 %v2618_v0  ;;  %v378_v2 = vsel %vm376_vm0, 4294967295, %v2619_v1  ;;  %v2400_v3 = vld [vmem:[#allocation5 + $0x4] ss:$8 sps:$4 sm:$0xff]   ;;  %v2402_v4 = vld [vmem:[#allocation5] ss:$8 sps:$4 sm:$0xff]   ;;  %v2408_v11 = vld [vmem:[%s2810_s30 + $0x30] sm:$0xff]   ;;  %v3586_v24 = vlaneseq }
  0x6e   : > { %v379_v5 = vsel %vm377_vm1, %v378_v2, 0  ;;  %386 = vmatprep.subr.bf16.mxu0 %v2400_v3  ;;  %v2403_v6 = vld [vmem:[#allocation5 + $0x14] ss:$8 sps:$4 sm:$0x3f]   ;;  %2290 = vmatprep.subr.bf16.mxu1 %v2400_v3  ;;  %v2406_v10 = vld [vmem:[%s2810_s30] sm:$0xff]   ;;  %vm339_vm2 = vcmask 220160  }
  0x6f   : > { %v2405_v7 = vld [vmem:[#allocation5 + $0x10] ss:$8 sps:$4 sm:$0x3f]   ;;  %387 = vmatpush1.bf16.msra.mxu0 %v2402_v4  ;;  %2292 = vmatpush1.bf16.msra.mxu1 %v2402_v4  ;;  %v384_v8 = vand.u32 %v2403_v6, %v379_v5  ;;  %v2410_v13 = vld [vmem:[%s2810_s30 + $0x38] sm:$0xff]   ;;  %v2413_v15 = vld [vmem:[%s2810_s30 + $0x40] sm:$0xff]   ;;  %v2845_v26 = vshrl.u32 %v3586_v24, 7 }
  0x70   : > { %v381_v9 = vand.u32 %v2405_v7, %v379_v5  ;;  %v2407_v12 = vld [vmem:[%s2810_s30 + $0x8] sm:$0xff]   ;;  %v2409_v14 = vld [vmem:[%s2810_s30 + $0x10] sm:$0xff]   ;;  %v2411_v16 = vld [vmem:[%s2810_s30 + $0x18] sm:$0xff]   ;;  %v2620_v22 = vmov 1983009808   ;;  %vm899_vm3 = vcmask 1040384  }
  0x71   : > { %388 = vmatprep.subr.bf16.mxu0 %v384_v8  ;;  %2291 = vmatprep.subr.bf16.mxu1 %v384_v8  ;;  %v2415_v17 = vld [vmem:[%s2810_s30 + $0x48] sm:$0xff]   ;;  %v2412_v18 = vld [vmem:[%s2810_s30 + $0x20] sm:$0xff]   ;;  %v2416_v19 = vld [vmem:[%s2810_s30 + $0x50] sm:$0xff]   ;;  %v570_v23 = vunpack.c.l.s4 %v2620_v22  ;;  %3606 = vst [vmem:[#allocation17_spill] sm:$0xff] %v2845_v26  ;;  %vm900_vm4 = vcmask 1042434   ;;  %vm902_vm6 = vcmask 1044484  }
  0x72   : > { %v2414_v20 = vld [vmem:[%s2810_s30 + $0x28] sm:$0xff]   ;;  %v2417_v21 = vld [vmem:[%s2810_s30 + $0x58] ss:$0 sps:$4 sm:$0x33]   ;;  %vm901_vm5 = vmor %vm899_vm3, %vm900_vm4  ;;  %vm904_vm7 = vcmask 1046534   ;;  %s2242_s1 = sshll.u32 %s2806_s5, 1 }
  0x73   : > { %389 = vmatpush1.bf16.msra.mxu0 %v381_v9  ;;  %2293 = vmatpush1.bf16.msra.mxu1 %v381_v9  ;;  %v571_v25 = vunpack.c.0.s8 %v570_v23  ;;  %vm903_vm8 = vmor %vm901_vm5, %vm902_vm6  ;;  %s2282_s22 = sshll.u32 %s2594_s15, 1  ;;  %s2283_s24 = sshll.u32 %s2598_s16, 2 }
  0x74   : > { %vm2866_vm9 = vmor %vm903_vm8, %vm904_vm7  ;;  %s2082_s26 = sadd.s32 %s2283_s24, %s2282_s22  ;;  %s227_s6 = scalar_lea.vmem [#allocation7], %s2242_s1 }
  0x75   : > { %v2848_v32 = vsub.s32 %v571_v25, %v2845_v26  ;;  %s2284_s20 = sshll.u32 %s2082_s26, 4  ;;  %s2086_s8 = sshll.u32 %s227_s6, 4  ;;  %s3489_s8 = int_to_ptr.vmem [resolvable:$true] %s2086_s8 }
  0x76   : > { %2260 = vmatmul.mubr.msk.bf16.vlgmr.msra.gmra.mrb[0].mxu0 %vm339_vm2, %v2406_v10  ;;  %2266 = vmatmul.mubr.msk.bf16.vlgmr.msra.gmra.mrb[0].mxu1 %vm339_vm2, %v2408_v11  ;;  %s3481_s15 = scalar_lea.vmem [#allocation8], %s2242_s1  ;;  %s3487_s10 = scalar_lea.hbm %s3577_s2, %s2284_s20 }
  0x77   : > { %424 = vmatprep.mubr.bf16.mxu0 %v2618_v0  ;;  %484 = vmatprep.mubr.bf16.mxu1 %v2618_v0  ;;  %s2102_s16 = sshll.u32 %s3481_s15, 4  ;;  %s3496_s27 = scalar_lea.hbm %s3578_s3, %s2284_s20  ;;  %s3498_s16 = int_to_ptr.vmem [resolvable:$true] %s2102_s16 }
  0x78   : > { %s2065_s9 = scalar_lea.sflag [#allocation4], %s2806_s5  ;;  %s2476_s7 = scalar_lea.vmem %s3489_s8, 32 }
  0x79   : > { %p2477_p6 = scmp.ne.s32.totalorder %s3489_s8, %s2476_s7  ;;  %s2622_s17 = smov [#allocation7]  }
  0x7a   : > { %s2480_s30 = sshll.u32 %s2622_s17, 4  ;;  %s2481_s30 = int_to_ptr.vmem [resolvable:$false] %s2480_s30 }
  0x7b   : > { %p2478_p8 = pnand %p2477_p6, %p2749_p11  ;;  %s2482_s1 = scalar_lea.vmem %s2481_s30, 64 }
  0x7c   : > { %p2483_p12 = scmp.lt.s32.totalorder %s3489_s8, %s2481_s30  ;;  %p2484_p13 = scmp.lt.s32.totalorder %s2482_s1, %s2476_s7 }
  0x7d   : > { %p2479_p10 = pneg %p2478_p8 }
  0x7e   : > { %2261 = vmatmul.mubr.msk.bf16.gmra.mrb[4].mxu0 %vm339_vm2, %v2407_v12  ;;  %2267 = vmatmul.mubr.msk.bf16.gmra.mrb[4].mxu1 %vm339_vm2, %v2410_v13  ;;  %p2485_p3 = por %p2484_p13, %p2483_p12 }
  0x7f   : > { %434 = vmatprep.mubr.bf16.mxu0 %v2618_v0  ;;  %494 = vmatprep.mubr.bf16.mxu1 %v2618_v0 }
  0x80   : > { %p2486_p7 = pnand %p2485_p3, %p2479_p10 }
  0x86   : > { %2262 = vmatmul.mubr.msk.bf16.gmra.mrb[8].mxu0 %vm339_vm2, %v2409_v14  ;;  %2268 = vmatmul.mubr.msk.bf16.gmra.mrb[8].mxu1 %vm339_vm2, %v2413_v15 }
  0x87   : > { %444 = vmatprep.mubr.bf16.mxu0 %v2618_v0  ;;  %504 = vmatprep.mubr.bf16.mxu1 %v2618_v0 }
  0x8e   : > { %2263 = vmatmul.mubr.msk.bf16.gmra.mrb[12].mxu0 %vm339_vm2, %v2411_v16  ;;  %2269 = vmatmul.mubr.msk.bf16.gmra.mrb[12].mxu1 %vm339_vm2, %v2415_v17 }
  0x8f   : > { %454 = vmatprep.mubr.bf16.mxu0 %v2618_v0  ;;  %514 = vmatprep.mubr.bf16.mxu1 %v2618_v0 }
  0x96   : > { %2264 = vmatmul.mubr.msk.bf16.gmra.mrb[16].mxu0 %vm339_vm2, %v2412_v18  ;;  %2270 = vmatmul.mubr.msk.bf16.gmra.mrb[16].mxu1 %vm339_vm2, %v2416_v19 }
  0x97   : > { %464 = vmatprep.mubr.bf16.mxu0 %v2618_v0  ;;  %522 = vmatprep.mubr.bf16.mxu1 %v2618_v0 }
  0x9e   : > { %2265 = vmatmul.mubr.msk.bf16.gmra.mrb[20].mxu0 %vm339_vm2, %v2414_v20  ;;  %2271 = vmatmul.mubr.msk.bf16.gmra.mrb[20].mxu1 %vm339_vm2, %v2417_v21 }
 0x149   : > { %v420_v27 = vpop.f32.mrb[0].mxu0  ;;  %v476_v28 = vpop.f32.mrb[0].mxu1 }
 0x14a   : > { %v421_v29 = vpop.f32.mrb[1].mxu0  ;;  %v478_v30 = vpop.f32.mrb[1].mxu1 }
 0x14b   : > { %v422_v31 = vpop.f32.mrb[2].mxu0  ;;  %v747_v33 = vcombine.low %v476_v28, %v478_v30  ;;  %v748_v34 = vcombine.high %v476_v28, %v478_v30  ;;  %v480_v35 = vpop.f32.mrb[2].mxu1 }
 0x14c   : > { %v423_v36 = vpop.f32.mrb[3].mxu0  ;;  %v482_v37 = vpop.f32.mrb[3].mxu1 }
 0x14d   : > { %v2851_v38 = vrot.slane %v747_v33, %v2848_v32  ;;  %v762_v39 = vrot.slane %v748_v34, %v2848_v32  ;;  %v765_v40 = vcombine.low %v480_v35, %v482_v37  ;;  %v766_v41 = vcombine.high %v480_v35, %v482_v37 }
 0x14f   : > { %v763_v42 = vcombine.high %v2851_v38, %v2851_v38  ;;  %v764_v43 = vcombine.high %v762_v39, %v762_v39  ;;  %v3587_v44 = vrot.slane %v2851_v38, 7  ;;  %v1020_v45 = vrot.slane %v762_v39, 7 }
 0x150   : > { %v773_v46 = vrot.slane %v765_v40, %v2848_v32  ;;  %v2859_v47 = vrot.slane %v766_v41, %v2848_v32 }
 0x151   : > { %v426_v48 = vpop.f32.mrb[4].mxu0  ;;  %v1016_v49 = vrot.slane %v3587_v44, 2  ;;  %v1017_v50 = vrot.slane %v763_v42, 7  ;;  %v1022_v51 = vrot.slane %v1020_v45, 2  ;;  %v1023_v52 = vrot.slane %v764_v43, 7  ;;  %v2863_v53 = vpop.f32.mrb[4].mxu1 }
 0x152   : > { %v428_v54 = vpop.f32.mrb[5].mxu0  ;;  %v781_v56 = vcombine.high %v773_v46, %v773_v46  ;;  %v1026_v58 = vrot.slane %v773_v46, 7  ;;  %v2873_v60 = vpop.f32.mrb[5].mxu1 }
 0x153   : > { %v567_v61 = vcombine.low %v426_v48, %v428_v54  ;;  %v568_v62 = vcombine.high %v426_v48, %v428_v54  ;;  %v430_v63 = vpop.f32.mrb[6].mxu0  ;;  %v2877_v0 = vsel %vm2866_vm9, %v1016_v49, %v1017_v50  ;;  %v1019_v1 = vrot.slane %v1017_v50, 2  ;;  %v2879_v2 = vpop.f32.mrb[6].mxu1 }
 0x154   : > { %v432_v3 = vpop.f32.mrb[7].mxu0  ;;  %v1024_v4 = vsel %vm2866_vm9, %v1022_v51, %v1023_v52  ;;  %v1025_v5 = vrot.slane %v1023_v52, 2  ;;  %v2885_v6 = vmul.f32 %v2877_v0, %v2877_v0  ;;  %v1028_v7 = vrot.slane %v1026_v58, 2  ;;  %v2887_v8 = vpop.f32.mrb[7].mxu1 }
 0x155   : > { %v575_v9 = vrot.slane %v567_v61, %v2848_v32  ;;  %v582_v10 = vrot.slane %v568_v62, %v2848_v32  ;;  %v585_v11 = vcombine.low %v430_v63, %v432_v3  ;;  %v586_v12 = vcombine.high %v430_v63, %v432_v3 }
 0x156   : > { %v1021_v13 = vsel %vm2866_vm9, %v1019_v1, %v1020_v45  ;;  %v2893_v14 = vmul.f32 %v1024_v4, %v1024_v4  ;;  %v2897_v15 = vsel %vm2866_vm9, %v1025_v5, %v1026_v58  ;;  %v1029_v16 = vrot.slane %v781_v56, 7 }
 0x157   : > { %v583_v17 = vcombine.high %v575_v9, %v575_v9  ;;  %v584_v18 = vcombine.high %v582_v10, %v582_v10  ;;  %v908_v19 = vrot.slane %v582_v10, 7  ;;  %v593_v20 = vrot.slane %v585_v11, %v2848_v32 }
 0x158   : > { %v600_v21 = vrot.slane %v586_v12, %v2848_v32  ;;  %v1332_v22 = vcombine.low %v1021_v13, %v1024_v4  ;;  %v2901_v23 = vmul.f32 %v1021_v13, %v1021_v13  ;;  %v2905_v25 = vsel %vm2866_vm9, %v1028_v7, %v1029_v16 }
 0x159   : > { %v2272_v27 = vrot.slane %v583_v17, 9  ;;  %v910_v28 = vrot.slane %v908_v19, 2  ;;  %v911_v29 = vrot.slane %v584_v18, 7  ;;  %v601_v30 = vcombine.high %v593_v20, %v593_v20  ;;  %v436_v31 = vpop.f32.mrb[8].mxu0  ;;  %v2907_v33 = vpop.f32.mrb[8].mxu1 }
 0x15a   : > { %v602_v34 = vcombine.high %v600_v21, %v600_v21  ;;  %v914_v35 = vrot.slane %v593_v20, 7  ;;  %v920_v36 = vrot.slane %v600_v21, 7  ;;  %v438_v37 = vpop.f32.mrb[9].mxu0  ;;  %v2910_v39 = vrot.slane %v1332_v22, %v2848_v32  ;;  %v2912_v40 = vpop.f32.mrb[9].mxu1 }
 0x15b   : > { %v909_v41 = vsel %vm2866_vm9, %v2272_v27, %v908_v19  ;;  %v912_v42 = vsel %vm2866_vm9, %v910_v28, %v911_v29  ;;  %v913_v43 = vrot.slane %v911_v29, 2  ;;  %v917_v45 = vrot.slane %v601_v30, 7  ;;  %v440_v46 = vpop.f32.mrb[10].mxu0  ;;  %v2918_v48 = vpop.f32.mrb[10].mxu1 }
 0x15c   : > { %v1170_v49 = vcombine.low %v909_v41, %v912_v42  ;;  %v1555_v50 = vmul.f32 %v909_v41, %v909_v41  ;;  %v1556_v51 = vmul.f32 %v912_v42, %v912_v42  ;;  %v916_v52 = vrot.slane %v914_v35, 2  ;;  %v442_v54 = vpop.f32.mrb[11].mxu0  ;;  %v2920_v56 = vpop.f32.mrb[11].mxu1 }
 0x15d   : > { %v915_v58 = vsel %vm2866_vm9, %v913_v43, %v914_v35  ;;  %v919_v61 = vrot.slane %v917_v45, 2  ;;  %v922_v62 = vrot.slane %v920_v36, 2  ;;  %v923_v63 = vrot.slane %v602_v34, 7 }
 0x15e   : > { %v2925_v1 = vrot.slane %v1170_v49, %v2848_v32  ;;  %v1683_v3 = vcombine.low %v1555_v50, %v1556_v51  ;;  %v918_v4 = vsel %vm2866_vm9, %v916_v52, %v917_v45  ;;  %v1557_v5 = vmul.f32 %v915_v58, %v915_v58 }
 0x15f   : > { %v921_v7 = vsel %vm2866_vm9, %v919_v61, %v920_v36  ;;  %v924_v9 = vsel %vm2866_vm9, %v922_v62, %v923_v63  ;;  %v925_v10 = vrot.slane %v923_v63, 2  ;;  %v1171_v11 = vcombine.low %v915_v58, %v918_v4 }
 0x160   : > { %v2934_v12 = vrot.slane %v1683_v3, %v2848_v32  ;;  %v1188_v13 = vcombine.low %v921_v7, %v924_v9  ;;  %v1558_v16 = vmul.f32 %v918_v4, %v918_v4  ;;  %v1559_v17 = vmul.f32 %v921_v7, %v921_v7 }
 0x161   : > { %v2937_v18 = vrot.slane %v1171_v11, %v2848_v32  ;;  %v1560_v19 = vmul.f32 %v924_v9, %v924_v9  ;;  %v603_v20 = vcombine.low %v436_v31, %v438_v37  ;;  %v604_v21 = vcombine.high %v436_v31, %v438_v37  ;;  %v2939_v22 = vpop.f32.mrb[12].mxu0  ;;  %v2941_v27 = vpop.f32.mrb[12].mxu1 }
 0x162   : > { %v2944_v28 = vrot.slane %v1188_v13, %v2848_v32  ;;  %v1684_v29 = vcombine.low %v1557_v5, %v1558_v16  ;;  %v621_v30 = vcombine.low %v440_v46, %v442_v54  ;;  %v622_v34 = vcombine.high %v440_v46, %v442_v54  ;;  %v2946_v35 = vpop.f32.mrb[13].mxu0  ;;  %v2948_v36 = vpop.f32.mrb[13].mxu1 }
 0x163   : > { %v1186_v41 = vcombine.low %v2925_v1, %v2937_v18  ;;  %v1187_v31 = vcombine.high %v2925_v1, %v2937_v18  ;;  %v1701_v37 = vcombine.low %v1559_v17, %v1560_v19  ;;  %v611_v42 = vrot.slane %v603_v20, %v2848_v32  ;;  %v2955_v43 = vpop.f32.mrb[14].mxu0  ;;  %v2957_v45 = vpop.f32.mrb[14].mxu1 }
 0x164   : > { %v2960_v49 = vrot.slane %v1684_v29, %v2848_v32  ;;  %v618_v46 = vrot.slane %v604_v21, %v2848_v32  ;;  %v629_v50 = vrot.slane %v621_v30, %v2848_v32  ;;  %v636_v51 = vrot.slane %v622_v34, %v2848_v32  ;;  %v2965_v52 = vpop.f32.mrb[15].mxu0  ;;  %v2967_v54 = vpop.f32.mrb[15].mxu1 }
 0x165   : > { %v2970_v58 = vrot.slane %v1701_v37, %v2848_v32  ;;  %v619_v61 = vcombine.high %v611_v42, %v611_v42  ;;  %v926_v62 = vrot.slane %v611_v42, 7  ;;  %v1845_v63 = vcombine.low %v2901_v23, %v2893_v14 }
 0x166   : > { %v1699_v3 = vcombine.low %v2934_v12, %v2960_v49  ;;  %v1700_v4 = vcombine.high %v2934_v12, %v2960_v49  ;;  %v620_v5 = vcombine.high %v618_v46, %v618_v46  ;;  %v2273_v7 = vrot.slane %v618_v46, 9 }
 0x167   : > { %v927_v9 = vsel %vm2866_vm9, %v925_v10, %v926_v62  ;;  %v928_v11 = vrot.slane %v926_v62, 2  ;;  %v929_v13 = vrot.slane %v619_v61, 7  ;;  %v637_v16 = vcombine.high %v629_v50, %v629_v50 }
 0x168   : > { %v933_v17 = vrot.slane %v620_v5, 7  ;;  %v1561_v19 = vmul.f32 %v927_v9, %v927_v9  ;;  %v638_v20 = vcombine.high %v636_v51, %v636_v51  ;;  %v936_v21 = vrot.slane %v629_v50, 7 }
 0x169   : > { %v930_v14 = vsel %vm2866_vm9, %v928_v11, %v929_v13  ;;  %v939_v23 = vrot.slane %v637_v16, 7  ;;  %v942_v29 = vrot.slane %v636_v51, 7  ;;  %v2983_v30 = vrot.slane %v1845_v63, %v2848_v32  ;;  %v2985_v12 = vpop.f32.mrb[16].mxu0  ;;  %v2987_v34 = vpop.f32.mrb[16].mxu1 }
 0x16a   : > { %v934_v10 = vsel %vm2866_vm9, %v2273_v7, %v933_v17  ;;  %v935_v37 = vrot.slane %v933_v17, 2  ;;  %v1189_v42 = vcombine.low %v927_v9, %v930_v14  ;;  %v1562_v49 = vmul.f32 %v930_v14, %v930_v14  ;;  %v2991_v46 = vpop.f32.mrb[17].mxu0  ;;  %v2993_v50 = vpop.f32.mrb[17].mxu1 }
 0x16b   : > { %v1563_v61 = vmul.f32 %v934_v10, %v934_v10  ;;  %v938_v62 = vrot.slane %v936_v21, 2  ;;  %v941_v51 = vrot.slane %v939_v23, 2  ;;  %v944_v5 = vrot.slane %v942_v29, 2  ;;  %v2995_v63 = vpop.f32.mrb[18].mxu0  ;;  %v520_v11 = vpop.f32.mrb[18].mxu1 }
 0x16c   : > { %v1203_v13 = vrot.slane %v1189_v42, %v2848_v32  ;;  %v1702_v16 = vcombine.low %v1561_v19, %v1562_v49  ;;  %v937_v7 = vsel %vm2866_vm9, %v935_v37, %v936_v21  ;;  %v3000_v17 = vrot.slane %v638_v20, 7  ;;  %v3002_v9 = vpop.f32.mrb[19].mxu0  ;;  %v521_v14 = vpop.f32.mrb[19].mxu1 }
 0x16d   : > { %v940_v24 = vsel %vm2866_vm9, %v938_v62, %v939_v23  ;;  %v943_v44 = vsel %vm2866_vm9, %v941_v51, %v942_v29  ;;  %v1206_v59 = vcombine.low %v934_v10, %v937_v7  ;;  %v1564_v57 = vmul.f32 %v937_v7, %v937_v7 }
 0x16e   : > { %v1204_v11 = vcombine.low %v2944_v28, %v1203_v13  ;;  %v1205_v19 = vcombine.high %v2944_v28, %v1203_v13  ;;  %v1716_v42 = vrot.slane %v1702_v16, %v2848_v32  ;;  %v3014_v20 = vsel %vm2866_vm9, %v944_v5, %v3000_v17 }
 0x16f   : > { %v947_v21 = vrot.slane %v3000_v17, 2  ;;  %v1207_v37 = vcombine.low %v940_v24, %v943_v44  ;;  %v1214_v23 = vrot.slane %v1206_v59, %v2848_v32  ;;  %v1565_v49 = vmul.f32 %v940_v24, %v940_v24 }
 0x170   : > { %v1490_v29 = vadd.f32 %v1204_v11, %v1186_v41  ;;  %v1511_v28 = vadd.f32 %v1205_v19, %v1187_v31  ;;  %v1717_v10 = vcombine.low %v2970_v58, %v1716_v42  ;;  %v1718_v62 = vcombine.high %v2970_v58, %v1716_v42 }
 0x171   : > { %v1221_v51 = vrot.slane %v1207_v37, %v2848_v32  ;;  %v1566_v5 = vmul.f32 %v943_v44, %v943_v44  ;;  %v3029_v13 = vmul.f32 %v3014_v20, %v3014_v20  ;;  %v1719_v24 = vcombine.low %v1563_v61, %v1564_v57  ;;  %v3031_v59 = vpop.f32.mrb[20].mxu0  ;;  %v524_v16 = vpop.f32.mrb[20].mxu1 }
 0x172   : > { %v2003_v41 = vadd.f32 %v1717_v10, %v1699_v3  ;;  %v2024_v7 = vadd.f32 %v1718_v62, %v1700_v4  ;;  %v3609_v1 = vcombine.high %v2859_v47, %v2859_v47  ;;  %v1333_v31 = vcombine.low %v2897_v15, %v2905_v25  ;;  %v3038_v58 = vpop.f32.mrb[21].mxu0  ;;  %v525_v44 = vpop.f32.mrb[21].mxu1 }
 0x173   : > { %v1222_v14 = vcombine.low %v1214_v23, %v1221_v51  ;;  %v1223_v11 = vcombine.high %v1214_v23, %v1221_v51  ;;  %v1720_v19 = vcombine.low %v1565_v49, %v1566_v5  ;;  %v1727_v57 = vrot.slane %v1719_v24, %v2848_v32  ;;  %v3041_v61 = vpop.f32.mrb[22].mxu0  ;;  %v526_v42 = vpop.f32.mrb[22].mxu1 }
 0x174   : > { %v1033_v18 = vrot.slane %v3609_v1, 7  ;;  %v3610_v3 = vrot.slane %v2859_v47, 9  ;;  %v3048_v10 = vrot.slane %v1333_v31, %v2848_v32  ;;  %v1593_v62 = vmul.f32 %v2897_v15, %v2897_v15  ;;  %v3052_v16 = vpop.f32.mrb[23].mxu0  ;;  %v527_v23 = vpop.f32.mrb[23].mxu1 }
 0x175   : > { %v3054_v49 = vadd.f32 %v1490_v29, %v1222_v14  ;;  %v3056_v51 = vadd.f32 %v1511_v28, %v1223_v11  ;;  %v1734_v5 = vrot.slane %v1720_v19, %v2848_v32  ;;  %v1594_v47 = vmul.f32 %v2905_v25, %v2905_v25 }
 0x176   : > { %v1034_v4 = vsel %vm2866_vm9, %v3610_v3, %v1033_v18  ;;  %v1035_v37 = vrot.slane %v1033_v18, 2  ;;  %v783_v15 = vcombine.low %v2863_v53, %v2873_v60  ;;  %v784_v28 = vcombine.high %v2863_v53, %v2873_v60 }
 0x177   : > { %v1595_v18 = vmul.f32 %v1034_v4, %v1034_v4  ;;  %v1735_v31 = vcombine.low %v1727_v57, %v1734_v5  ;;  %v1736_v29 = vcombine.high %v1727_v57, %v1734_v5  ;;  %v1846_v44 = vcombine.low %v1593_v62, %v1594_v47 }
 0x178   : > { %v791_v14 = vrot.slane %v783_v15, %v2848_v32  ;;  %v639_v25 = vcombine.low %v2939_v22, %v2946_v35  ;;  %v640_v11 = vcombine.high %v2939_v22, %v2946_v35  ;;  %v657_v19 = vcombine.low %v2955_v43, %v2965_v52 }
 0x179   : > { %v3076_v42 = vadd.f32 %v2003_v41, %v1735_v31  ;;  %v3078_v3 = vadd.f32 %v2024_v7, %v1736_v29  ;;  %v3081_v57 = vrot.slane %v1846_v44, %v2848_v32  ;;  %v798_v53 = vrot.slane %v784_v28, %v2848_v32 }
 0x17a   : > { %v799_v60 = vcombine.high %v791_v14, %v791_v14  ;;  %v1036_v62 = vrot.slane %v791_v14, 7  ;;  %v647_v23 = vrot.slane %v639_v25, %v2848_v32  ;;  %v654_v5 = vrot.slane %v640_v11, %v2848_v32 }
 0x17b   : > { %v800_v41 = vcombine.high %v798_v53, %v798_v53  ;;  %v1042_v7 = vrot.slane %v798_v53, 7 }
 0x17c   : > { %v1037_v47 = vsel %vm2866_vm9, %v1035_v37, %v1036_v62  ;;  %v1038_v15 = vrot.slane %v1036_v62, 2  ;;  %v1039_v31 = vrot.slane %v799_v60, 7  ;;  %v655_v29 = vcombine.high %v647_v23, %v647_v23 }
 0x17d   : > { %v1044_v44 = vrot.slane %v1042_v7, 2  ;;  %v3092_v28 = vrot.slane %v800_v41, 7  ;;  %v1350_v14 = vcombine.low %v1034_v4, %v1037_v47  ;;  %v1596_v25 = vmul.f32 %v1037_v47, %v1037_v47 }
 0x17e   : > { %v1040_v11 = vsel %vm2866_vm9, %v1038_v15, %v1039_v31  ;;  %v1041_v22 = vrot.slane %v1039_v31, 2  ;;  %v656_v1 = vcombine.high %v654_v5, %v654_v5  ;;  %v948_v24 = vrot.slane %v647_v23, 7 }
 0x17f   : > { %v3099_v53 = vsel %vm2866_vm9, %v1044_v44, %v3092_v28  ;;  %v3103_v60 = vrot.slane %v1350_v14, %v2848_v32  ;;  %v1597_v62 = vmul.f32 %v1040_v11, %v1040_v11  ;;  %v1863_v47 = vcombine.low %v1595_v18, %v1596_v25 }
 0x180   : > { %v1043_v4 = vsel %vm2866_vm9, %v1041_v22, %v1042_v7  ;;  %v3109_v41 = vmul.f32 %v3099_v53, %v3099_v53  ;;  %v949_v23 = vsel %vm2866_vm9, %v947_v21, %v948_v24  ;;  %v950_v44 = vrot.slane %v948_v24, 2 }
 0x181   : > { %v1351_v15 = vcombine.low %v1040_v11, %v1043_v4  ;;  %v1598_v31 = vmul.f32 %v1043_v4, %v1043_v4  ;;  %v951_v35 = vrot.slane %v655_v29, 7  ;;  %v3116_v14 = vrot.slane %v1863_v47, %v2848_v32 }
 0x182   : > { %v954_v37 = vrot.slane %v654_v5, 7  ;;  %v2274_v26 = vrot.slane %v656_v1, 9  ;;  %v1224_v22 = vcombine.low %v3014_v20, %v949_v23  ;;  %v1568_v11 = vmul.f32 %v949_v23, %v949_v23 }
 0x183   : > { %v3120_v7 = vrot.slane %v1351_v15, %v2848_v32  ;;  %v1864_v18 = vcombine.low %v1597_v62, %v1598_v31  ;;  %v952_v17 = vsel %vm2866_vm9, %v950_v44, %v951_v35  ;;  %v953_v25 = vrot.slane %v951_v35, 2 }
 0x184   : > { %v1232_v21 = vrot.slane %v1224_v22, %v2848_v32  ;;  %v1569_v24 = vmul.f32 %v952_v17, %v952_v17  ;;  %v658_v29 = vcombine.high %v2955_v43, %v2965_v52  ;;  %v1737_v47 = vcombine.low %v3029_v13, %v1568_v11 }
 0x185   : > { %v1366_v1 = vcombine.low %v3103_v60, %v3120_v7  ;;  %v3132_v5 = vrot.slane %v1864_v18, %v2848_v32  ;;  %v955_v62 = vsel %vm2866_vm9, %v953_v25, %v954_v37  ;;  %v665_v23 = vrot.slane %v657_v19, %v2848_v32 }
 0x186   : > { %v1225_v35 = vcombine.low %v952_v17, %v955_v62  ;;  %v1570_v4 = vmul.f32 %v955_v62, %v955_v62  ;;  %v672_v15 = vrot.slane %v658_v29, %v2848_v32  ;;  %v801_v31 = vcombine.low %v2879_v2, %v2887_v8 }
 0x187   : > { %v1745_v22 = vrot.slane %v1737_v47, %v2848_v32  ;;  %v673_v18 = vcombine.high %v665_v23, %v665_v23  ;;  %v958_v17 = vrot.slane %v665_v23, 7  ;;  %v802_v25 = vcombine.high %v2879_v2, %v2887_v8 }
 0x188   : > { %v1239_v44 = vrot.slane %v1225_v35, %v2848_v32  ;;  %v1738_v37 = vcombine.low %v1569_v24, %v1570_v4  ;;  %v674_v13 = vcombine.high %v672_v15, %v672_v15  ;;  %v964_v19 = vrot.slane %v672_v15, 7 }
 0x189   : > { %v961_v29 = vrot.slane %v673_v18, 7  ;;  %v959_v43 = vsel %vm2866_vm9, %v2274_v26, %v958_v17  ;;  %v960_v20 = vrot.slane %v958_v17, 2 }
 0x18a   : > { %v1240_v11 = vcombine.low %v1232_v21, %v1239_v44  ;;  %v1241_v62 = vcombine.high %v1232_v21, %v1239_v44  ;;  %v1752_v52 = vrot.slane %v1738_v37, %v2848_v32  ;;  %v966_v35 = vrot.slane %v964_v19, 2 }
 0x18b   : > { %v3152_v24 = vrot.slane %v674_v13, 7  ;;  %v962_v2 = vsel %vm2866_vm9, %v960_v20, %v961_v29  ;;  %v963_v8 = vrot.slane %v961_v29, 2  ;;  %v809_v20 = vrot.slane %v801_v31, %v2848_v32 }
 0x18c   : > { %v1492_v4 = vadd.f32 %v3054_v49, %v1240_v11  ;;  %v1513_v47 = vadd.f32 %v3056_v51, %v1241_v62  ;;  %v1753_v23 = vcombine.low %v1745_v22, %v1752_v52  ;;  %v1754_v15 = vcombine.high %v1745_v22, %v1752_v52 }
 0x18d   : > { %v968_v21 = vsel %vm2866_vm9, %v966_v35, %v3152_v24  ;;  %v969_v26 = vrot.slane %v3152_v24, 2  ;;  %v1242_v18 = vcombine.low %v959_v43, %v962_v2  ;;  %v1571_v49 = vmul.f32 %v959_v43, %v959_v43 }
 0x18e   : > { %v2005_v44 = vadd.f32 %v3076_v42, %v1753_v23  ;;  %v2026_v37 = vadd.f32 %v3078_v3, %v1754_v15  ;;  %v965_v51 = vsel %vm2866_vm9, %v963_v8, %v964_v19  ;;  %v1572_v52 = vmul.f32 %v962_v2, %v962_v2 }
 0x18f   : > { %v1574_v22 = vmul.f32 %v968_v21, %v968_v21  ;;  %v1243_v13 = vcombine.low %v965_v51, %v968_v21  ;;  %v1250_v17 = vrot.slane %v1242_v18, %v2848_v32  ;;  %v1573_v11 = vmul.f32 %v965_v51, %v965_v51 }
 0x190   : > { %v816_v62 = vrot.slane %v802_v25, %v2848_v32  ;;  %v1755_v29 = vcombine.low %v1571_v49, %v1572_v52  ;;  %v817_v35 = vcombine.high %v809_v20, %v809_v20  ;;  %v1048_v42 = vrot.slane %v809_v20, 7 }
 0x191   : > { %v675_v3 = vcombine.low %v2985_v12, %v2991_v46  ;;  %v1257_v43 = vrot.slane %v1243_v13, %v2848_v32  ;;  %v1756_v23 = vcombine.low %v1573_v11, %v1574_v22  ;;  %v3611_v31 = vrot.slane %v3092_v28, 2 }
 0x192   : > { %v818_v19 = vcombine.high %v816_v62, %v816_v62  ;;  %v1054_v15 = vrot.slane %v816_v62, 7  ;;  %v1763_v2 = vrot.slane %v1755_v29, %v2848_v32  ;;  %v1050_v21 = vrot.slane %v1048_v42, 2 }
 0x193   : > { %v1049_v8 = vsel %vm2866_vm9, %v3611_v31, %v1048_v42  ;;  %v1051_v25 = vrot.slane %v817_v35, 7  ;;  %v1258_v18 = vcombine.low %v1250_v17, %v1257_v43  ;;  %v1259_v49 = vcombine.high %v1250_v17, %v1257_v43 }
 0x194   : > { %v1770_v51 = vrot.slane %v1756_v23, %v2848_v32  ;;  %v2278_v52 = vrot.slane %v818_v19, 9  ;;  %v1368_v13 = vcombine.low %v3099_v53, %v1049_v8  ;;  %v1600_v11 = vmul.f32 %v1049_v8, %v1049_v8 }
 0x195   : > { %v1052_v20 = vsel %vm2866_vm9, %v1050_v21, %v1051_v25  ;;  %v1053_v22 = vrot.slane %v1051_v25, 2  ;;  %v3181_v62 = vadd.f32 %v1492_v4, %v1258_v18  ;;  %v3183_v28 = vadd.f32 %v1513_v47, %v1259_v49 }
 0x196   : > { %v1771_v29 = vcombine.low %v1763_v2, %v1770_v51  ;;  %v1772_v31 = vcombine.high %v1763_v2, %v1770_v51  ;;  %v3188_v17 = vrot.slane %v1368_v13, %v2848_v32  ;;  %v1601_v42 = vmul.f32 %v1052_v20, %v1052_v20 }
 0x197   : > { %v1055_v35 = vsel %vm2866_vm9, %v1053_v22, %v1054_v15  ;;  %v1881_v43 = vcombine.low %v3109_v41, %v1600_v11  ;;  %v676_v2 = vcombine.high %v2985_v12, %v2991_v46  ;;  %v683_v15 = vrot.slane %v675_v3, %v2848_v32 }
 0x198   : > { %v3191_v23 = vadd.f32 %v2005_v44, %v1771_v29  ;;  %v3193_v19 = vadd.f32 %v2026_v37, %v1772_v31  ;;  %v1369_v53 = vcombine.low %v1052_v20, %v1055_v35  ;;  %v1602_v4 = vmul.f32 %v1055_v35, %v1055_v35 }
 0x199   : > { %v3196_v47 = vrot.slane %v1881_v43, %v2848_v32  ;;  %v819_v8 = vcombine.low %v2907_v33, %v2912_v40  ;;  %v820_v44 = vcombine.high %v2907_v33, %v2912_v40  ;;  %v693_v37 = vcombine.low %v2995_v63, %v3002_v9 }
 0x19a   : > { %v3204_v21 = vrot.slane %v1369_v53, %v2848_v32  ;;  %v1882_v41 = vcombine.low %v1601_v42, %v1602_v4  ;;  %v690_v25 = vrot.slane %v676_v2, %v2848_v32  ;;  %v691_v18 = vcombine.high %v683_v15, %v683_v15 }
 0x19b   : > { %v970_v49 = vrot.slane %v683_v15, 7  ;;  %v827_v12 = vrot.slane %v819_v8, %v2848_v32  ;;  %v834_v33 = vrot.slane %v820_v44, %v2848_v32 }
 0x19c   : > { %v1384_v46 = vcombine.low %v3188_v17, %v3204_v21  ;;  %v3217_v51 = vrot.slane %v1882_v41, %v2848_v32  ;;  %v692_v40 = vcombine.high %v690_v25, %v690_v25  ;;  %v973_v13 = vrot.slane %v691_v18, 7 }
 0x19d   : > { %v971_v20 = vsel %vm2866_vm9, %v969_v26, %v970_v49  ;;  %v972_v22 = vrot.slane %v970_v49, 2  ;;  %v976_v31 = vrot.slane %v690_v25, 7  ;;  %v835_v4 = vcombine.high %v827_v12, %v827_v12 }
 0x19e   : > { %v1575_v35 = vmul.f32 %v971_v20, %v971_v20  ;;  %v975_v43 = vrot.slane %v973_v13, 2  ;;  %v979_v53 = vrot.slane %v692_v40, 7  ;;  %v836_v26 = vcombine.high %v834_v33, %v834_v33 }
 0x19f   : > { %v974_v42 = vsel %vm2866_vm9, %v972_v22, %v973_v13  ;;  %v978_v24 = vrot.slane %v976_v31, 2  ;;  %v1058_v41 = vrot.slane %v827_v12, 7  ;;  %v1061_v44 = vrot.slane %v835_v4, 7 }
 0x1a0   : > { %v1260_v2 = vcombine.low %v971_v20, %v974_v42  ;;  %v1576_v15 = vmul.f32 %v974_v42, %v974_v42  ;;  %v977_v8 = vsel %vm2866_vm9, %v975_v43, %v976_v31  ;;  %v1064_v18 = vrot.slane %v834_v33, 7 }
 0x1a1   : > { %v980_v25 = vsel %vm2866_vm9, %v978_v24, %v979_v53  ;;  %v1577_v29 = vmul.f32 %v977_v8, %v977_v8  ;;  %v1059_v20 = vsel %vm2866_vm9, %v2278_v52, %v1058_v41  ;;  %v1060_v42 = vrot.slane %v1058_v41, 2 }
 0x1a2   : > { %v1268_v49 = vrot.slane %v1260_v2, %v2848_v32  ;;  %v1773_v22 = vcombine.low %v1575_v35, %v1576_v15  ;;  %v1261_v13 = vcombine.low %v977_v8, %v980_v25  ;;  %v1578_v40 = vmul.f32 %v980_v25, %v980_v25 }
 0x1a3   : > { %v1063_v3 = vrot.slane %v1061_v44, 2  ;;  %v1066_v31 = vrot.slane %v1064_v18, 2  ;;  %v1067_v12 = vrot.slane %v836_v26, 7  ;;  %v1062_v53 = vsel %vm2866_vm9, %v1060_v42, %v1061_v44 }
 0x1a4   : > { %v1781_v11 = vrot.slane %v1773_v22, %v2848_v32  ;;  %v1275_v33 = vrot.slane %v1261_v13, %v2848_v32  ;;  %v1774_v43 = vcombine.low %v1577_v29, %v1578_v40  ;;  %v1603_v4 = vmul.f32 %v1059_v20, %v1059_v20 }
 0x1a5   : > { %v1065_v35 = vsel %vm2866_vm9, %v1063_v3, %v1064_v18  ;;  %v1068_v24 = vsel %vm2866_vm9, %v1066_v31, %v1067_v12  ;;  %v1069_v52 = vrot.slane %v1067_v12, 2  ;;  %v1386_v2 = vcombine.low %v1059_v20, %v1062_v53 }
 0x1a6   : > { %v1276_v15 = vcombine.low %v1268_v49, %v1275_v33  ;;  %v1277_v8 = vcombine.high %v1268_v49, %v1275_v33  ;;  %v1788_v41 = vrot.slane %v1774_v43, %v2848_v32  ;;  %v1387_v26 = vcombine.low %v1065_v35, %v1068_v24 }
 0x1a7   : > { %v3247_v25 = vrot.slane %v1386_v2, %v2848_v32  ;;  %v1604_v29 = vmul.f32 %v1062_v53, %v1062_v53  ;;  %v1605_v22 = vmul.f32 %v1065_v35, %v1065_v35  ;;  %v1606_v44 = vmul.f32 %v1068_v24, %v1068_v24 }
 0x1a8   : > { %v3250_v13 = vadd.f32 %v3181_v62, %v1276_v15  ;;  %v3253_v3 = vadd.f32 %v3183_v28, %v1277_v8  ;;  %v1789_v18 = vcombine.low %v1781_v11, %v1788_v41  ;;  %v1790_v40 = vcombine.high %v1781_v11, %v1788_v41 }
 0x1a9   : > { %v3256_v20 = vrot.slane %v1387_v26, %v2848_v32  ;;  %v1899_v49 = vcombine.low %v1603_v4, %v1604_v29  ;;  %v1900_v42 = vcombine.low %v1605_v22, %v1606_v44  ;;  %v694_v31 = vcombine.high %v2995_v63, %v3002_v9 }
 0x1aa   : > { %v3261_v12 = vadd.f32 %v3191_v23, %v1789_v18  ;;  %v3264_v33 = vadd.f32 %v3193_v19, %v1790_v40  ;;  %v701_v62 = vrot.slane %v693_v37, %v2848_v32  ;;  %v837_v28 = vcombine.low %v2918_v48, %v2920_v56 }
 0x1ab   : > { %v1402_v11 = vcombine.low %v3247_v25, %v3256_v20  ;;  %v3277_v23 = vrot.slane %v1899_v49, %v2848_v32  ;;  %v3280_v19 = vrot.slane %v1900_v42, %v2848_v32  ;;  %v708_v53 = vrot.slane %v694_v31, %v2848_v32 }
 0x1ac   : > { %v709_v4 = vcombine.high %v701_v62, %v701_v62  ;;  %v2275_v63 = vrot.slane %v701_v62, 9  ;;  %v838_v9 = vcombine.high %v2918_v48, %v2920_v56  ;;  %v845_v24 = vrot.slane %v837_v28, %v2848_v32 }
 0x1ad   : > { %v711_v2 = vcombine.low %v3031_v59, %v3038_v58  ;;  %v710_v15 = vcombine.high %v708_v53, %v708_v53  ;;  %v986_v41 = vrot.slane %v708_v53, 7  ;;  %v712_v48 = vcombine.high %v3031_v59, %v3038_v58 }
 0x1ae   : > { %v983_v8 = vrot.slane %v709_v4, 7  ;;  %v852_v26 = vrot.slane %v838_v9, %v2848_v32  ;;  %v853_v29 = vcombine.high %v845_v24, %v845_v24  ;;  %v1070_v22 = vrot.slane %v845_v24, 7 }
 0x1af   : > { %v719_v56 = vrot.slane %v711_v2, %v2848_v32  ;;  %v988_v40 = vrot.slane %v986_v41, 2  ;;  %v989_v49 = vrot.slane %v710_v15, 7  ;;  %v3626_v55 = vcombine.low %v3277_v23, %v3280_v19 }
 0x1b0   : > { %v984_v44 = vsel %vm2866_vm9, %v2275_v63, %v983_v8  ;;  %v985_v18 = vrot.slane %v983_v8, 2  ;;  %v854_v31 = vcombine.high %v852_v26, %v852_v26  ;;  %v1071_v62 = vsel %vm2866_vm9, %v1069_v52, %v1070_v22 }
 0x1b1   : > { %v1579_v42 = vmul.f32 %v984_v44, %v984_v44  ;;  %v1072_v28 = vrot.slane %v1070_v22, 2  ;;  %v990_v59 = vsel %vm2866_vm9, %v988_v40, %v989_v49  ;;  %v991_v58 = vrot.slane %v989_v49, 2 }
 0x1b2   : > { %v987_v53 = vsel %vm2866_vm9, %v985_v18, %v986_v41  ;;  %v1073_v4 = vrot.slane %v853_v29, 7  ;;  %v1581_v63 = vmul.f32 %v990_v59, %v990_v59  ;;  %v1076_v2 = vrot.slane %v852_v26, 7 }
 0x1b3   : > { %v1278_v9 = vcombine.low %v984_v44, %v987_v53  ;;  %v1580_v24 = vmul.f32 %v987_v53, %v987_v53  ;;  %v1079_v35 = vrot.slane %v854_v31, 7  ;;  %v1607_v37 = vmul.f32 %v1071_v62, %v1071_v62 }
 0x1b4   : > { %v1074_v15 = vsel %vm2866_vm9, %v1072_v28, %v1073_v4  ;;  %v1075_v8 = vrot.slane %v1073_v4, 2  ;;  %v1078_v43 = vrot.slane %v1076_v2, 2  ;;  %v726_v29 = vrot.slane %v712_v48, %v2848_v32 }
 0x1b5   : > { %v1286_v52 = vrot.slane %v1278_v9, %v2848_v32  ;;  %v1791_v22 = vcombine.low %v1579_v42, %v1580_v24  ;;  %v1404_v41 = vcombine.low %v1071_v62, %v1074_v15  ;;  %v1608_v40 = vmul.f32 %v1074_v15, %v1074_v15 }
 0x1b6   : > { %v1077_v18 = vsel %vm2866_vm9, %v1075_v8, %v1076_v2  ;;  %v727_v44 = vcombine.high %v719_v56, %v719_v56  ;;  %v1080_v49 = vsel %vm2866_vm9, %v1078_v43, %v1079_v35  ;;  %v728_v62 = vcombine.high %v726_v29, %v726_v29 }
 0x1b7   : > { %v1799_v26 = vrot.slane %v1791_v22, %v2848_v32  ;;  %v3314_v31 = vrot.slane %v1404_v41, %v2848_v32  ;;  %v1609_v28 = vmul.f32 %v1077_v18, %v1077_v18  ;;  %v1405_v53 = vcombine.low %v1077_v18, %v1080_v49 }
 0x1b8   : > { %v1610_v42 = vmul.f32 %v1080_v49, %v1080_v49  ;;  %v1917_v4 = vcombine.low %v1607_v37, %v1608_v40  ;;  %v992_v9 = vrot.slane %v719_v56, 7  ;;  %v995_v24 = vrot.slane %v727_v44, 7 }
 0x1b9   : > { %v998_v2 = vrot.slane %v726_v29, 7  ;;  %v729_v48 = vcombine.low %v3041_v61, %v3052_v16  ;;  %v3319_v15 = vrot.slane %v1405_v53, %v2848_v32  ;;  %v1001_v35 = vrot.slane %v728_v62, 7 }
 0x1ba   : > { %v1918_v8 = vcombine.low %v1609_v28, %v1610_v42  ;;  %v3322_v43 = vrot.slane %v1917_v4, %v2848_v32  ;;  %v993_v22 = vsel %vm2866_vm9, %v991_v58, %v992_v9  ;;  %v994_v41 = vrot.slane %v992_v9, 2 }
 0x1bb   : > { %v997_v37 = vrot.slane %v995_v24, 2  ;;  %v1000_v18 = vrot.slane %v998_v2, 2  ;;  %v1003_v44 = vrot.slane %v1001_v35, 2  ;;  %v1279_v53 = vcombine.low %v990_v59, %v993_v22 }
 0x1bc   : > { %v3331_v29 = vrot.slane %v1918_v8, %v2848_v32  ;;  %v996_v49 = vsel %vm2866_vm9, %v994_v41, %v995_v24  ;;  %v1582_v9 = vmul.f32 %v993_v22, %v993_v22  ;;  %v737_v59 = vrot.slane %v729_v48, %v2848_v32 }
 0x1bd   : > { %v999_v28 = vsel %vm2866_vm9, %v997_v37, %v998_v2  ;;  %v1002_v58 = vsel %vm2866_vm9, %v1000_v18, %v1001_v35  ;;  %v1293_v8 = vrot.slane %v1279_v53, %v2848_v32  ;;  %v1583_v40 = vmul.f32 %v996_v49, %v996_v49 }
 0x1be   : > { %v1296_v62 = vcombine.low %v996_v49, %v999_v28  ;;  %v1584_v56 = vmul.f32 %v999_v28, %v999_v28  ;;  %v1585_v24 = vmul.f32 %v1002_v58, %v1002_v58  ;;  %v1792_v2 = vcombine.low %v1581_v63, %v1582_v9 }
 0x1bf   : > { %v730_v35 = vcombine.high %v3041_v61, %v3052_v16  ;;  %v1294_v37 = vcombine.low %v1286_v52, %v1293_v8  ;;  %v1295_v18 = vcombine.high %v1286_v52, %v1293_v8  ;;  %v855_v4 = vcombine.low %v2941_v27, %v2948_v36 }
 0x1c0   : > { %v1304_v41 = vrot.slane %v1296_v62, %v2848_v32  ;;  %v1809_v42 = vcombine.low %v1583_v40, %v1584_v56  ;;  %v1806_v22 = vrot.slane %v1792_v2, %v2848_v32  ;;  %v745_v28 = vcombine.high %v737_v59, %v737_v59 }
 0x1c1   : > { %v744_v49 = vrot.slane %v730_v35, %v2848_v32  ;;  %v1004_v53 = vrot.slane %v737_v59, 7  ;;  %v1495_v62 = vadd.f32 %v3250_v13, %v1294_v37  ;;  %v1516_v63 = vadd.f32 %v3253_v3, %v1295_v18 }
 0x1c2   : > { %v1817_v61 = vrot.slane %v1809_v42, %v2848_v32  ;;  %v856_v16 = vcombine.high %v2941_v27, %v2948_v36  ;;  %v1807_v52 = vcombine.low %v1799_v26, %v1806_v22  ;;  %v1808_v48 = vcombine.high %v1799_v26, %v1806_v22 }
 0x1c3   : > { %v746_v56 = vcombine.high %v744_v49, %v744_v49  ;;  %v1005_v40 = vsel %vm2866_vm9, %v1003_v44, %v1004_v53  ;;  %v2276_v9 = vrot.slane %v745_v28, 9  ;;  %v1008_v8 = vrot.slane %v744_v49, 7 }
 0x1c4   : > { %v1297_v2 = vcombine.low %v1002_v58, %v1005_v40  ;;  %v1586_v35 = vmul.f32 %v1005_v40, %v1005_v40  ;;  %v2008_v59 = vadd.f32 %v3261_v12, %v1807_v52  ;;  %v2029_v13 = vadd.f32 %v3264_v33, %v1808_v48 }
 0x1c5   : > { %v1011_v3 = vrot.slane %v746_v56, 7  ;;  %v863_v42 = vrot.slane %v855_v4, %v2848_v32  ;;  %v1009_v27 = vsel %vm2866_vm9, %v2276_v9, %v1008_v8  ;;  %v1010_v36 = vrot.slane %v1008_v8, 2 }
 0x1c6   : > { %v1311_v26 = vrot.slane %v1297_v2, %v2848_v32  ;;  %v1810_v37 = vcombine.low %v1585_v24, %v1586_v35  ;;  %v1587_v44 = vmul.f32 %v1009_v27, %v1009_v27  ;;  %v870_v22 = vrot.slane %v856_v16, %v2848_v32 }
 0x1c7   : > { %v1013_v18 = vrot.slane %v1011_v3, 2  ;;  %v871_v58 = vcombine.high %v863_v42, %v863_v42  ;;  %v1012_v12 = vsel %vm2866_vm9, %v1010_v36, %v1011_v3  ;;  %v3612_v4 = vrot.slane %v2851_v38, 7 }
 0x1c8   : > { %v1312_v49 = vcombine.low %v1304_v41, %v1311_v26  ;;  %v1313_v33 = vcombine.high %v1304_v41, %v1311_v26  ;;  %v1824_v28 = vrot.slane %v1810_v37, %v2848_v32  ;;  %v1314_v52 = vcombine.low %v1009_v27, %v1012_v12 }
 0x1c9   : > { %v1015_v53 = vsel %vm2866_vm9, %v1013_v18, %v3612_v4  ;;  %v1588_v48 = vmul.f32 %v1012_v12, %v1012_v12  ;;  %v872_v24 = vcombine.high %v870_v22, %v870_v22  ;;  %v2279_v36 = vrot.slane %v863_v42, 9 }
 0x1ca   : > { %v1315_v56 = vcombine.low %v1015_v53, %v2877_v0  ;;  %v1496_v40 = vadd.f32 %v1495_v62, %v1312_v49  ;;  %v1517_v16 = vadd.f32 %v1516_v63, %v1313_v33  ;;  %v1589_v9 = vmul.f32 %v1015_v53, %v1015_v53 }
 0x1cb   : > { %v1322_v8 = vrot.slane %v1314_v52, %v2848_v32  ;;  %v1825_v2 = vcombine.low %v1817_v61, %v1824_v28  ;;  %v1826_v35 = vcombine.high %v1817_v61, %v1824_v28  ;;  %v1827_v41 = vcombine.low %v1587_v44, %v1588_v48 }
 0x1cc   : > { %v1329_v3 = vrot.slane %v1315_v56, %v2848_v32  ;;  %v1828_v38 = vcombine.low %v1589_v9, %v2885_v6  ;;  %v1083_v26 = vrot.slane %v871_v58, 7  ;;  %v1086_v12 = vrot.slane %v870_v22, 7 }
 0x1cd   : > { %v1835_v27 = vrot.slane %v1827_v41, %v2848_v32  ;;  %v2009_v37 = vadd.f32 %v2008_v59, %v1825_v2  ;;  %v2030_v18 = vadd.f32 %v2029_v13, %v1826_v35  ;;  %v1089_v33 = vrot.slane %v872_v24, 7 }
 0x1ce   : > { %v1330_v0 = vcombine.low %v1322_v8, %v1329_v3  ;;  %v1331_v62 = vcombine.high %v1322_v8, %v1329_v3  ;;  %v1842_v63 = vrot.slane %v1828_v38, %v2848_v32  ;;  %v1084_v49 = vsel %vm2866_vm9, %v2279_v36, %v1083_v26 }
 0x1cf   : > { %v1085_v61 = vrot.slane %v1083_v26, 2  ;;  %v1088_v44 = vrot.slane %v1086_v12, 2  ;;  %v1611_v28 = vmul.f32 %v1084_v49, %v1084_v49  ;;  %v1091_v22 = vrot.slane %v1089_v33, 2 }
 0x1d0   : > { %v1497_v4 = vadd.f32 %v1496_v40, %v1330_v0  ;;  %v1518_v6 = vadd.f32 %v1517_v16, %v1331_v62  ;;  %v1843_v42 = vcombine.low %v1835_v27, %v1842_v63  ;;  %v1844_v58 = vcombine.high %v1835_v27, %v1842_v63 }
 0x1d1   : > { %v1087_v59 = vsel %vm2866_vm9, %v1085_v61, %v1086_v12  ;;  %v1090_v13 = vsel %vm2866_vm9, %v1088_v44, %v1089_v33  ;;  %v873_v53 = vcombine.low %v2957_v45, %v2967_v54  ;;  %v3613_v52 = vcombine.low %v2910_v39, %v3048_v10 }
 0x1d2   : > { %v3614_v24 = vcombine.high %v2910_v39, %v3048_v10  ;;  %v2010_v40 = vadd.f32 %v2009_v37, %v1843_v42  ;;  %v2031_v16 = vadd.f32 %v2030_v18, %v1844_v58  ;;  %v1422_v9 = vcombine.low %v1084_v49, %v1087_v59 }
 0x1d3   : > { %v1498_v48 = vadd.f32 %v1497_v4, %v3613_v52  ;;  %v1612_v8 = vmul.f32 %v1087_v59, %v1087_v59  ;;  %v1613_v2 = vmul.f32 %v1090_v13, %v1090_v13  ;;  %v874_v35 = vcombine.high %v2957_v45, %v2967_v54 }
 0x1d4   : > { %v1519_v56 = vadd.f32 %v1518_v6, %v3614_v24  ;;  %v3615_v3 = vcombine.high %v3103_v60, %v3120_v7  ;;  %v3616_v39 = vcombine.low %v2983_v30, %v3081_v57  ;;  %v3617_v36 = vcombine.high %v2983_v30, %v3081_v57 }
 0x1d5   : > { %v1499_v41 = vadd.f32 %v1498_v48, %v1366_v1  ;;  %v1430_v27 = vrot.slane %v1422_v9, %v2848_v32  ;;  %v1935_v37 = vcombine.low %v1611_v28, %v1612_v8  ;;  %v881_v45 = vrot.slane %v873_v53, %v2848_v32 }
 0x1d6   : > { %v1520_v38 = vadd.f32 %v1519_v56, %v3615_v3  ;;  %v2011_v10 = vadd.f32 %v2010_v40, %v3616_v39  ;;  %v2032_v26 = vadd.f32 %v2031_v16, %v3617_v36  ;;  %v888_v54 = vrot.slane %v874_v35, %v2848_v32 }
 0x1d7   : > { %v1500_v60 = vadd.f32 %v1499_v41, %v1384_v46  ;;  %v3618_v7 = vcombine.high %v3188_v17, %v3204_v21  ;;  %v3619_v18 = vcombine.low %v3116_v14, %v3132_v5  ;;  %v3620_v57 = vcombine.high %v3116_v14, %v3132_v5 }
 0x1d8   : > { %v1943_v0 = vrot.slane %v1935_v37, %v2848_v32  ;;  %v889_v62 = vcombine.high %v881_v45, %v881_v45  ;;  %v890_v63 = vcombine.high %v888_v54, %v888_v54  ;;  %v1092_v49 = vrot.slane %v881_v45, 7 }
 0x1d9   : > { %v1521_v1 = vadd.f32 %v1520_v38, %v3618_v7  ;;  %v2012_v30 = vadd.f32 %v2011_v10, %v3619_v18  ;;  %v2033_v12 = vadd.f32 %v2032_v26, %v3620_v57  ;;  %v3621_v46 = vcombine.low %v3196_v47, %v3217_v51 }
 0x1da   : > { %v3622_v17 = vcombine.high %v3196_v47, %v3217_v51  ;;  %v1098_v44 = vrot.slane %v888_v54, 7  ;;  %v891_v33 = vcombine.low %v2987_v34, %v2993_v50  ;;  %v1093_v14 = vsel %vm2866_vm9, %v1091_v22, %v1092_v49 }
 0x1db   : > { %v2013_v61 = vadd.f32 %v2012_v30, %v3621_v46  ;;  %v1094_v5 = vrot.slane %v1092_v49, 2  ;;  %v1095_v28 = vrot.slane %v889_v62, 7  ;;  %v1101_v4 = vrot.slane %v890_v63, 7 }
 0x1dc   : > { %v2034_v21 = vadd.f32 %v2033_v12, %v3622_v17  ;;  %v1100_v6 = vrot.slane %v1098_v44, 2  ;;  %v1423_v42 = vcombine.low %v1090_v13, %v1093_v14  ;;  %v1614_v58 = vmul.f32 %v1093_v14, %v1093_v14 }
 0x1dd   : > { %v898_v59 = vrot.slane %v891_v33, %v2848_v32  ;;  %v1096_v53 = vsel %vm2866_vm9, %v1094_v5, %v1095_v28  ;;  %v1097_v47 = vrot.slane %v1095_v28, 2  ;;  %v1103_v51 = vrot.slane %v1101_v4, 2 }
 0x1de   : > { %v1501_v34 = vadd.f32 %v1500_v60, %v1402_v11  ;;  %v1437_v50 = vrot.slane %v1423_v42, %v2848_v32  ;;  %v1615_v22 = vmul.f32 %v1096_v53, %v1096_v53  ;;  %v1936_v52 = vcombine.low %v1613_v2, %v1614_v58 }
 0x1df   : > { %v1102_v48 = vsel %vm2866_vm9, %v1100_v6, %v1101_v4  ;;  %v1099_v13 = vsel %vm2866_vm9, %v1097_v47, %v1098_v44  ;;  %v1104_v24 = vrot.slane %v898_v59, 7  ;;  %v3623_v56 = vcombine.low %v3314_v31, %v3319_v15 }
 0x1e0   : > { %v3624_v16 = vcombine.high %v3247_v25, %v3256_v20  ;;  %v1438_v11 = vcombine.low %v1430_v27, %v1437_v50  ;;  %v1439_v8 = vcombine.high %v1430_v27, %v1437_v50  ;;  %v1440_v35 = vcombine.low %v1096_v53, %v1099_v13 }
 0x1e1   : > { %v1502_v40 = vadd.f32 %v1501_v34, %v3623_v56  ;;  %v1616_v41 = vmul.f32 %v1099_v13, %v1099_v13  ;;  %v1950_v2 = vrot.slane %v1936_v52, %v2848_v32  ;;  %v1105_v3 = vsel %vm2866_vm9, %v1103_v51, %v1104_v24 }
 0x1e2   : > { %v1522_v9 = vadd.f32 %v1521_v1, %v3624_v16  ;;  %v3625_v38 = vcombine.high %v3314_v31, %v3319_v15  ;;  %v1617_v10 = vmul.f32 %v1102_v48, %v1102_v48  ;;  %v1448_v36 = vrot.slane %v1440_v35, %v2848_v32  ;;  %v3630_v16 = vld [vmem:[#allocation17_spill] sm:$0xff] }
 0x1e3   : > { %v1953_v26 = vcombine.low %v1615_v22, %v1616_v41  ;;  %v1441_v37 = vcombine.low %v1102_v48, %v1105_v3  ;;  %v1503_v25 = vadd.f32 %v1502_v40, %v1438_v11  ;;  %v1951_v20 = vcombine.low %v1943_v0, %v1950_v2 }
 0x1e4   : > { %v1523_v39 = vadd.f32 %v1522_v9, %v3625_v38  ;;  %v1952_v45 = vcombine.high %v1943_v0, %v1950_v2  ;;  %v1618_v54 = vmul.f32 %v1105_v3, %v1105_v3  ;;  %v2014_v7 = vadd.f32 %v2013_v61, %v3626_v55 }
 0x1e5   : > { %v1455_v60 = vrot.slane %v1441_v37, %v2848_v32  ;;  %v3627_v31 = vcombine.high %v3277_v23, %v3280_v19  ;;  %v1961_v1 = vrot.slane %v1953_v26, %v2848_v32  ;;  %v3628_v12 = vcombine.low %v3322_v43, %v3331_v29 }
 0x1e6   : > { %v1524_v27 = vadd.f32 %v1523_v39, %v1439_v8  ;;  %v1954_v18 = vcombine.low %v1617_v10, %v1618_v54  ;;  %v3629_v62 = vcombine.high %v3322_v43, %v3331_v29  ;;  %v2621_v6 = vmov 1966171168  }
 0x1e7   : > { %v2035_v15 = vadd.f32 %v2034_v21, %v3627_v31  ;;  %v1456_v30 = vcombine.low %v1448_v36, %v1455_v60  ;;  %v1457_v57 = vcombine.high %v1448_v36, %v1455_v60  ;;  %v2015_v0 = vadd.f32 %v2014_v7, %v3628_v12 }
 0x1e8   : > { %v1968_v49 = vrot.slane %v1954_v18, %v2848_v32  ;;  %v1536_v43 = vunpack.c.l.s4 %v2621_v6  ;;  %v3631_v38 = vlaneseq }
 0x1e9   : > { %v2036_v63 = vadd.f32 %v2035_v15, %v3629_v62  ;;  %v1504_v46 = vadd.f32 %v1503_v25, %v1456_v30  ;;  %v1525_v61 = vadd.f32 %v1524_v27, %v1457_v57  ;;  %v2016_v17 = vadd.f32 %v2015_v0, %v1951_v20 }
 0x1ea   : > { %v1969_v19 = vcombine.low %v1961_v1, %v1968_v49  ;;  %v1970_v21 = vcombine.high %v1961_v1, %v1968_v49  ;;  %v1537_v34 = vunpack.c.0.s8 %v1536_v43  ;;  %vm3477_vm10 = vcmp.lt.s32.totalorder %v3631_v38, 256 }
 0x1eb   : > { %v2037_v23 = vadd.f32 %v2036_v63, %v1952_v45  ;;  %v1505_v44 = vrot.slane %v1504_v46, 4  ;;  %v1526_v33 = vrot.slane %v1525_v61, 4 }
 0x1ec   : > { %v2017_v14 = vadd.f32 %v2016_v17, %v1969_v19  ;;  %v1540_v9 = vsub.s32 %v1537_v34, %v3630_v16 }
 0x1ed   : > { %v2038_v5 = vadd.f32 %v2037_v23, %v1970_v21  ;;  %v1506_v28 = vadd.f32 %v1505_v44, %v1504_v46  ;;  %v1527_v4 = vadd.f32 %v1526_v33, %v1525_v61 }
 0x1ee   : > { %v2018_v29 = vrot.slane %v2017_v14, 4 }
 0x1ef   : > { %v2039_v42 = vrot.slane %v2038_v5, 4  ;;  %v1507_v32 = vrot.slane %v1506_v28, 2  ;;  %v1528_v58 = vrot.slane %v1527_v4, 2 }
 0x1f0   : > { %v2019_v59 = vadd.f32 %v2018_v29, %v2017_v14 }
 0x1f1   : > { %v2040_v53 = vadd.f32 %v2039_v42, %v2038_v5  ;;  %v1508_v47 = vadd.f32 %v1507_v32, %v1506_v28  ;;  %v1529_v51 = vadd.f32 %v1528_v58, %v1527_v4 }
 0x1f2   : > { %v2020_v50 = vrot.slane %v2019_v59, 2 }
 0x1f3   : > { %v2041_v22 = vrot.slane %v2040_v53, 2  ;;  %v1509_v52 = vrot.slane %v1508_v47, 1  ;;  %v1530_v48 = vrot.slane %v1529_v51, 1 }
 0x1f4   : > { %v2021_v13 = vadd.f32 %v2020_v50, %v2019_v59 }
 0x1f5   : > { %v2042_v24 = vadd.f32 %v2041_v22, %v2040_v53  ;;  %v1510_v56 = vadd.f32 %v1509_v52, %v1508_v47  ;;  %v1531_v40 = vadd.f32 %v1530_v48, %v1529_v51 }
 0x1f6   : > { %v2022_v11 = vrot.slane %v2021_v13, 1 }
 0x1f7   : > { %v2043_v8 = vrot.slane %v2042_v24, 1  ;;  %v1534_v35 = vcombine.low %v1510_v56, %v1531_v40 }
 0x1f8   : > { %v2023_v41 = vadd.f32 %v2022_v11, %v2021_v13 }
 0x1f9   : > { %v2044_v2 = vadd.f32 %v2043_v8, %v2042_v24  ;;  %v1541_v3 = vrot.slane %v1534_v35, %v1540_v9 }
 0x1fb   : > { %v2047_v10 = vcombine.low %v2023_v41, %v2044_v2  ;;  %v1548_v36 = vrot.slane %v1541_v3, %v1540_v9 }
 0x1fd   : > { %v2054_v26 = vrot.slane %v2047_v10, %v1540_v9  ;;  %1554 = vst.msk [vmem:[%s227_s6] sm:$0x3] %vm3477_vm10, %v1548_v36 }
 0x1fe   : > { %2489 = shalt.err (!%p2486_p7)
}
 0x1ff   : > { %s2490_s22 = scalar_lea.hbm %s3487_s10, 32  ;;  %s2494_s20 = scalar_lea.hbm %s3577_s2, 128 }
 0x200   : > { %p2491_p1 = scmp.ne.s32.totalorder %s3487_s10, %s2490_s22  ;;  %p2495_p5 = scmp.lt.u32.totalorder %s3487_s10, %s3577_s2 }
 0x201   : > { %p2496_p9 = scmp.lt.u32.totalorder %s2494_s20, %s2490_s22  ;;  %p2498_p6 = scmp.lt.u32.totalorder %s2490_s22, %s3487_s10 }
 0x202   : > { %p2492_p2 = pnand %p2491_p1, %p2749_p11 }
 0x203   : > { %p2497_p0 = por %p2496_p9, %p2495_p5 }
 0x204   : > { %p2493_p4 = pneg %p2492_p2 }
 0x205   : > { %p2499_p8 = por %p2498_p6, %p2497_p0 }
 0x207   : > { %p2500_p10 = pnand %p2499_p8, %p2493_p4 }
 0x209   : > { %2503 = shalt.err (!%p2500_p10)
}
 0x20a   : > { %2304 = dma.vmem_to_hbm [thread:$0]  (%p2749_p11), %s3489_s8, 32, %s3487_s10, %s2065_s9   ;;  %v2061_v37 = vrot.slane %v2054_v26, %v1540_v9 }
 0x20b   : > { %s2070_s28 = scalar_lea.sflag [#allocation9], %s2806_s5  ;;  %s2504_s11 = scalar_lea.vmem %s3498_s16, 32 }
 0x20c   : > { %2063 = vst.msk [vmem:[%s3481_s15] sm:$0x3] %vm3477_vm10, %v2061_v37  ;;  %p2505_p12 = scmp.ne.s32.totalorder %s3498_s16, %s2504_s11  ;;  %s2623_s21 = smov [#allocation8]  }
 0x20d   : > { %s2508_s7 = sshll.u32 %s2623_s21, 4  ;;  %s2509_s7 = int_to_ptr.vmem [resolvable:$false] %s2508_s7 }
 0x20e   : > { %p2506_p13 = pnand %p2505_p12, %p2749_p11  ;;  %s2510_s17 = scalar_lea.vmem %s2509_s7, 64 }
 0x20f   : > { %p2511_p7 = scmp.lt.s32.totalorder %s3498_s16, %s2509_s7  ;;  %p2512_p1 = scmp.lt.s32.totalorder %s2510_s17, %s2504_s11 }
 0x210   : > { %p2507_p3 = pneg %p2506_p13 }
 0x211   : > { %p2513_p2 = por %p2512_p1, %p2511_p7 }
 0x213   : > { %p2514_p4 = pnand %p2513_p2, %p2507_p3 }
 0x215   : > { %2517 = shalt.err (!%p2514_p4)
}
 0x216   : > { %s2518_s5 = scalar_lea.hbm %s3496_s27, 32  ;;  %s2522_s10 = scalar_lea.hbm %s3578_s3, 128 }
 0x217   : > { %p2519_p5 = scmp.ne.s32.totalorder %s3496_s27, %s2518_s5  ;;  %p2523_p6 = scmp.lt.u32.totalorder %s3496_s27, %s3578_s3 }
 0x218   : > { %p2524_p8 = scmp.lt.u32.totalorder %s2522_s10, %s2518_s5  ;;  %p2526_p12 = scmp.lt.u32.totalorder %s2518_s5, %s3496_s27 }
 0x219   : > { %p2520_p9 = pnand %p2519_p5, %p2749_p11 }
 0x21a   : > { %p2525_p10 = por %p2524_p8, %p2523_p6 }
 0x21b   : > { %p2521_p0 = pneg %p2520_p9 }
 0x21c   : > { %p2527_p13 = por %p2526_p12, %p2525_p10 }
 0x21e   : > { %p2528_p3 = pnand %p2527_p13, %p2521_p0 }
 0x220   : > { %2531 = shalt.err (!%p2528_p3)
}
 0x221   : > { %2305 = dma.vmem_to_hbm [thread:$0]  (%p2749_p11), %s3498_s16, 32, %s3496_s27, %s2070_s28  }
 0x222 PF: > { %p2326_p7 = scmp.ge.s32.totalorder %s2610_s19, 2  ;;  %s2114_s1 = sand.u32 1, %s2582_s12  }
 0x223   : > { %p3634_p1 = scmp.ne.s32.totalorder %s3594_s25, 0  ;;  %s2115_s22 = scalar_lea.sflag [#allocation4], %s2114_s1 }
 0x225   : > { %p2317_p2 = pnand %p2326_p7, %p3634_p1 }
 0x227   : > { %2573 = dma.done.wait (!%p2317_p2), %s2115_s22, 32  }
 0x228   : > { %2575 = vsyncadd (!%p2317_p2), %s2115_s22, 4294967264  ;;  %s2124_s24 = scalar_lea.sflag [#allocation9], %s2114_s1 }
 0x229   : > { %2577 = dma.done.wait (!%p2317_p2), %s2124_s24, 32  }
 0x22a   : > { %2579 = vsyncadd (!%p2317_p2), %s2124_s24, 4294967264  ;;  %s24_s19 = sadd.s32 1, %s2610_s19   ;;  %s3635_s15 = sld [smem:[#allocation14_spill]] }
 0x22b   : > { %p21_p4 = scmp.ge.s32.totalorder %s24_s19, 6   ;;  %s3636_s17 = sld [smem:[#allocation15_spill]] }
 0x22c   : > { %s3637_s29 = sld [smem:[#allocation16_spill]]  ;;  %s3638_s12 = smov %s2586_s13 }
 0x22d   : > { %s3639_s13 = smov %s2590_s14  ;;  %s3640_s14 = smov %s2766_s23 }
 0x22e   : > { %s3641_s16 = smov %s2606_s18  ;;  %23 = sbr.rel (!%p21_p4) target bundleno = 12 (0xc), region = 94 }
 0x232   : > { %s3642_s18 = smov %s3637_s29 }
 0x235   :  { %2129 = vsyncpa [#allocation3], 1 }
 0x236   :  { %2131 = vsyncpa [#allocation3 + $0x1], 1 }
 0x237   :  { %2132 = vsyncpa [#allocation6], 1 }
 0x238   :  { %2133 = vsyncpa [#allocation4], 1 }
 0x239   :  { %2135 = vsyncpa [#allocation4 + $0x1], 1 }
 0x23a   :  { %2136 = vsyncpa [#allocation9], 1 }
 0x23b   :  { %2138 = vsyncpa [#allocation9 + $0x1], 1 }

</bundles_post_ra>
